<compile_context>
chip_gen: v7x
topology: tpu7x:2x2x1
jax: 0.10.0
libtpu: 0.0.40
codegen_flags: <defaults>
</compile_context>

<pallas_src>
import jax
import jax.numpy as jnp
import numpy as np
from jax import lax
from jax.experimental import pallas as pl
from jax.experimental.pallas import tpu as pltpu


def _round_up(x, m):
    return (x + m - 1) // m * m


# ---------------------------------------------------------------------------
# Kernel 1: LSTM recurrence (K timesteps per grid step), emits h for all steps.
# ---------------------------------------------------------------------------
def lstm_recurrence_kernel(x_ref, wih_hbm, whh_hbm, b_hbm, h_out_ref,
                           wih_scr, whh_scr, b_scr, h_scr, c_scr, dma_sem):
    t = pl.program_id(0)

    @pl.when(t == 0)
    def _init():
        h_scr[...] = jnp.zeros_like(h_scr)
        c_scr[...] = jnp.zeros_like(c_scr)
        # Single-buffer the time-invariant weights: DMA once from HBM into scratch.
        copies = [
            pltpu.make_async_copy(wih_hbm, wih_scr, dma_sem.at[0]),
            pltpu.make_async_copy(whh_hbm, whh_scr, dma_sem.at[1]),
            pltpu.make_async_copy(b_hbm, b_scr, dma_sem.at[2]),
        ]
        for cp in copies:
            cp.start()
        for cp in copies:
            cp.wait()

    w_ih = wih_scr[...]            # (E, 4*Hp)  weight dtype (bf16 or f32)
    w_hh = whh_scr[...]            # (Hp, 4*Hp)
    bias = b_scr[...]              # (1, 4*Hp)  f32
    cdt = w_ih.dtype
    Hp = h_scr.shape[-1]
    K = x_ref.shape[0]

    def step(k, carry):
        h, c = carry                                   # f32 (B_pad, Hp)
        x_t = x_ref[k]                                 # (B_pad, E), weight dtype
        gates = (jnp.dot(x_t, w_ih, preferred_element_type=jnp.float32)
                 + jnp.dot(h.astype(cdt), w_hh, preferred_element_type=jnp.float32)
                 + bias)                               # (B_pad, 4*Hp) f32
        # PyTorch gate order [i, f, g, o]; Hp is a multiple of 128 -> lane-aligned slices.
        i_g = jax.nn.sigmoid(gates[:, 0 * Hp:1 * Hp])
        f_g = jax.nn.sigmoid(gates[:, 1 * Hp:2 * Hp])
        g_g = jnp.tanh(gates[:, 2 * Hp:3 * Hp])
        o_g = jax.nn.sigmoid(gates[:, 3 * Hp:4 * Hp])
        c_new = f_g * c + i_g * g_g
        h_new = o_g * jnp.tanh(c_new)
        h_out_ref[k] = h_new.astype(h_out_ref.dtype)
        return h_new, c_new

    h_fin, c_fin = lax.fori_loop(0, K, step, (h_scr[...], c_scr[...]), unroll=True)
    h_scr[...] = h_fin
    c_scr[...] = c_fin


# ---------------------------------------------------------------------------
# Kernel 2: batched output projection (dropout is identity in eval mode).
# ---------------------------------------------------------------------------
def fc_proj_kernel(h_ref, wfc_ref, bfc_ref, o_ref):
    o_ref[...] = (jnp.dot(h_ref[...], wfc_ref[...],
                          preferred_element_type=jnp.float32)
                  + bfc_ref[...]).astype(o_ref.dtype)


# ---------------------------------------------------------------------------
# Wrapper
# ---------------------------------------------------------------------------
def decoder_rnn_pallas(features, captions, params, *,
                       weight_dtype=jnp.bfloat16, steps_per_block=8):
    """features: (B, E) f32, captions: (B, L) int32 -> logits (B, L, V) f32."""
    embed, W_ih, W_hh = params["embed"], params["W_ih"], params["W_hh"]
    b, W_fc, b_fc = params["b"], params["W_fc"], params["b_fc"]

    B = features.shape[0]
    E = W_ih.shape[0]
    H = W_hh.shape[0]
    V = W_fc.shape[1]

    # glue: embedding gather + prepend image features as timestep 0 (batch_first)
    word_embeds = jnp.take(embed, captions[:, :-1], axis=0)            # (B, L-1, E)
    inputs = jnp.concatenate([features[:, None, :], word_embeds], 1)   # (B, T, E)
    T = inputs.shape[1]

    # TPU-friendly padding: sublane(8) batch, lane(128) hidden/vocab, K-step time blocks.
    B_pad = _round_up(max(B, 8), 8)
    H_pad = _round_up(H, 128)
    V_pad = _round_up(V, 128)
    K = steps_per_block
    T_pad = _round_up(T, K)

    x = jnp.transpose(inputs, (1, 0, 2)).astype(jnp.float32)           # (T, B, E)
    x = jnp.pad(x, ((0, T_pad - T), (0, B_pad - B), (0, 0))).astype(weight_dtype)

    def pad_gates(w, axis):
        # pad each of the 4 PyTorch gate blocks [i,f,g,o] from H to H_pad columns
        parts = jnp.split(w, 4, axis=axis)
        pads = [(0, 0)] * w.ndim
        pads[axis] = (0, H_pad - H)
        return jnp.concatenate([jnp.pad(p, pads) for p in parts], axis=axis)

    W_ih_p = pad_gates(W_ih, 1).astype(weight_dtype)                                # (E, 4Hp)
    W_hh_p = jnp.pad(pad_gates(W_hh, 1), ((0, H_pad - H), (0, 0))).astype(weight_dtype)
    b_p = pad_gates(b, 1).astype(jnp.float32)                                       # (1, 4Hp)
    W_fc_p = jnp.pad(W_fc, ((0, H_pad - H), (0, V_pad - V))).astype(weight_dtype)
    b_fc_p = jnp.pad(b_fc, ((0, 0), (0, V_pad - V))).astype(jnp.float32)

    wbytes = jnp.dtype(weight_dtype).itemsize

    # ---- recurrence: sequential grid over time, K steps per grid invocation ----
    rec_vmem = int(
        E * 4 * H_pad * wbytes + H_pad * 4 * H_pad * wbytes + 8 * 4 * H_pad * 4
        + 2 * K * B_pad * E * wbytes          # x tiles (double-buffered)
        + 2 * K * B_pad * H_pad * wbytes      # h_out tiles (double-buffered)
        + 2 * B_pad * H_pad * 4               # h/c state
        + (8 << 20))                          # headroom

    h_all = pl.pallas_call(
        lstm_recurrence_kernel,
        out_shape=jax.ShapeDtypeStruct((T_pad, B_pad, H_pad), weight_dtype),
        grid_spec=pltpu.PrefetchScalarGridSpec(
            num_scalar_prefetch=0,
            grid=(T_pad // K,),
            in_specs=[
                pl.BlockSpec((K, B_pad, E), lambda t: (t, 0, 0)),
                pl.BlockSpec(memory_space=pl.ANY),    # W_ih: DMA'd once to scratch
                pl.BlockSpec(memory_space=pl.ANY),    # W_hh
                pl.BlockSpec(memory_space=pl.ANY),    # b
            ],
            out_specs=pl.BlockSpec((K, B_pad, H_pad), lambda t: (t, 0, 0)),
            scratch_shapes=[
                pltpu.VMEM((E, 4 * H_pad), weight_dtype),     # W_ih (single buffer)
                pltpu.VMEM((H_pad, 4 * H_pad), weight_dtype), # W_hh (single buffer)
                pltpu.VMEM((1, 4 * H_pad), jnp.float32),      # bias
                pltpu.VMEM((B_pad, H_pad), jnp.float32),      # h state
                pltpu.VMEM((B_pad, H_pad), jnp.float32),      # c state
                pltpu.SemaphoreType.DMA((3,)),
            ],
        ),
        compiler_params=pltpu.CompilerParams(
            dimension_semantics=("arbitrary",),       # true sequential recurrence
            vmem_limit_bytes=rec_vmem),
    )(x, W_ih_p, W_hh_p, b_p)

    # ---- projection: one big (T_pad*B_pad, H_pad) x (H_pad, V_pad) matmul ----
    M = T_pad * B_pad
    h_flat = h_all.reshape(M, H_pad)

    def pick_tile(dim, prefs):
        for p in prefs:
            if dim % p == 0:
                return p
        return dim

    TM = pick_tile(M, (256, 128, 64, 32, 16, 8))
    TV = pick_tile(V_pad, (512, 256, 128))

    proj_vmem = int(2 * (TM * H_pad * wbytes + H_pad * TV * wbytes
                         + 8 * TV * 4 + TM * TV * 4) + (8 << 20))

    logits = pl.pallas_call(
        fc_proj_kernel,
        out_shape=jax.ShapeDtypeStruct((M, V_pad), jnp.float32),
        grid_spec=pltpu.PrefetchScalarGridSpec(
            num_scalar_prefetch=0,
            grid=(M // TM, V_pad // TV),
            in_specs=[
                pl.BlockSpec((TM, H_pad), lambda i, j: (i, 0)),
                pl.BlockSpec((H_pad, TV), lambda i, j: (0, j)),
                pl.BlockSpec((1, TV), lambda i, j: (0, j)),
            ],
            out_specs=pl.BlockSpec((TM, TV), lambda i, j: (i, j)),
        ),
        compiler_params=pltpu.CompilerParams(
            dimension_semantics=("parallel", "parallel"),   # megacore on v7x
            vmem_limit_bytes=proj_vmem),
    )(h_flat, W_fc_p, b_fc_p)

    logits = logits.reshape(T_pad, B_pad, V_pad)
    logits = jnp.transpose(logits, (1, 0, 2))[:B, :T, :V]   # (B, T, V), batch_first
    return logits


# ---------------------------------------------------------------------------
# Pure-JAX reference (matches PyTorch nn.LSTM gate order i,f,g,o) and init.
# ---------------------------------------------------------------------------
def decoder_rnn_ref(features, captions, params):
    embed, W_ih, W_hh, b = params["embed"], params["W_ih"], params["W_hh"], params["b"]
    W_fc, b_fc = params["W_fc"], params["b_fc"]
    word_embeds = jnp.take(embed, captions[:, :-1], axis=0)
    inputs = jnp.concatenate([features[:, None, :], word_embeds], 1)
    x = jnp.transpose(inputs, (1, 0, 2)).astype(jnp.float32)   # (T, B, E)
    B = x.shape[1]
    H = W_hh.shape[0]

    def step(carry, x_t):
        h, c = carry
        gates = x_t @ W_ih + h @ W_hh + b
        i_g = jax.nn.sigmoid(gates[:, 0 * H:1 * H])
        f_g = jax.nn.sigmoid(gates[:, 1 * H:2 * H])
        g_g = jnp.tanh(gates[:, 2 * H:3 * H])
        o_g = jax.nn.sigmoid(gates[:, 3 * H:4 * H])
        c = f_g * c + i_g * g_g
        h = o_g * jnp.tanh(c)
        return (h, c), h @ W_fc + b_fc

    h0 = jnp.zeros((B, H), jnp.float32)
    _, ys = lax.scan(step, (h0, h0), x)
    return jnp.transpose(ys, (1, 0, 2))


def init_params(key, embed_size, hidden_size, vocab_size):
    """Deterministic init mirroring DecoderRNN.init_weights + PyTorch LSTM defaults."""
    ks = jax.random.split(key, 7)
    E, H, V = embed_size, hidden_size, vocab_size
    k = 1.0 / np.sqrt(H)
    embed = jax.random.uniform(ks[0], (V, E), jnp.float32, -0.1, 0.1)
    W_ih = jax.random.uniform(ks[1], (E, 4 * H), jnp.float32, -k, k)
    W_hh = jax.random.uniform(ks[2], (H, 4 * H), jnp.float32, -k, k)
    b_ih = jax.random.uniform(ks[3], (4 * H,), jnp.float32, -k, k)
    b_hh = jax.random.uniform(ks[4], (4 * H,), jnp.float32, -k, k)
    std = np.sqrt(2.0 / (H + V))                     # xavier_normal_ on fc weight
    W_fc = std * jax.random.normal(ks[5], (H, V), jnp.float32)
    b_fc = jnp.full((1, V), 0.1, jnp.float32)        # fc bias filled with 0.1
    return {"embed": embed, "W_ih": W_ih, "W_hh": W_hh,
            "b": (b_ih + b_hh)[None, :], "W_fc": W_fc, "b_fc": b_fc}


if __name__ == "__main__":
    # small shapes: batch=2, embed=32, hidden=32, vocab=128, caption_len=8
    B, E, H, V, L = 2, 32, 32, 128, 8

    key = jax.random.PRNGKey(0)
    k_feat, k_cap, k_par = jax.random.split(key, 3)

    params = init_params(k_par, E, H, V)
    features = jax.random.normal(k_feat, (B, E), jnp.float32)
    captions = jax.random.randint(k_cap, (B, L), 0, V, jnp.int32)

    ref = decoder_rnn_ref(features, captions, params)

    # f32 weights: tight numerical check against the pure-JAX reference.
    out_f32 = jax.block_until_ready(
        decoder_rnn_pallas(features, captions, params, weight_dtype=jnp.float32))
    assert out_f32.shape == (B, L, V), out_f32.shape
    np.testing.assert_allclose(np.asarray(out_f32), np.asarray(ref),
                               rtol=2e-3, atol=2e-3)

    # bf16 weights (production path, f32 accumulate): coarse sanity check.
    out_bf16 = jax.block_until_ready(
        decoder_rnn_pallas(features, captions, params, weight_dtype=jnp.bfloat16))
    assert out_bf16.shape == (B, L, V), out_bf16.shape
    np.testing.assert_allclose(np.asarray(out_bf16), np.asarray(ref),
                               rtol=1e-1, atol=1e-1)

    print("KERNEL_OK")
</pallas_src>

<mosaic_0001>
module attributes {stable_mosaic.version = 11 : i64} {
  func.func @lstm_recurrence_kernel(%arg0: i32, %arg1: memref<8x8x32xf32, #tpu.memory_space<vmem>>, %arg2: memref<32x512xf32, #tpu.memory_space<any>>, %arg3: memref<128x512xf32, #tpu.memory_space<any>>, %arg4: memref<1x512xf32, #tpu.memory_space<any>>, %arg5: memref<8x8x128xf32, #tpu.memory_space<vmem>>, %arg6: memref<32x512xf32, #tpu.memory_space<vmem>>, %arg7: memref<128x512xf32, #tpu.memory_space<vmem>>, %arg8: memref<1x512xf32, #tpu.memory_space<vmem>>, %arg9: memref<8x128xf32, #tpu.memory_space<vmem>>, %arg10: memref<8x128xf32, #tpu.memory_space<vmem>>, %arg11: memref<3x!tpu.dma_semaphore, #tpu.memory_space<semaphore_mem>>) attributes {dimension_semantics = [#tpu.dimension_semantics<arbitrary>], iteration_bounds = array<i64: 1>, scalar_prefetch = 0 : i64, scratch_operands = 6 : i64, tpu.core_type = #tpu.core_type<tc>, window_params = [{transform_indices = @transform_0, window_bounds = array<i64: 8, 8, 32>}, {}, {}, {}, {transform_indices = @transform_4, window_bounds = array<i64: 8, 8, 128>}]} {
    %c0_i32 = arith.constant 0 : i32
    %0 = arith.cmpi eq, %arg0, %c0_i32 : i32
    %1 = arith.extui %0 : i1 to i32
    %c0_i32_0 = arith.constant 0 : i32
    %2 = arith.cmpi ne, %1, %c0_i32_0 : i32
    scf.if %2 {
      %cst_86 = arith.constant 0.000000e+00 : f32
      %306 = vector.broadcast %cst_86 : f32 to vector<8x128xf32>
      %c0_87 = arith.constant 0 : index
      %c0_88 = arith.constant 0 : index
      %307 = vector.load %arg9[%c0_87, %c0_88] : memref<8x128xf32, #tpu.memory_space<vmem>>, vector<8x128xf32>
      tpu.vector_store %arg9[%c0_87, %c0_88], %306 {strides = array<i32>} : memref<8x128xf32, #tpu.memory_space<vmem>>, vector<8x128xf32>,
      %cst_89 = arith.constant 0.000000e+00 : f32
      %308 = vector.broadcast %cst_89 : f32 to vector<8x128xf32>
      %c0_90 = arith.constant 0 : index
      %c0_91 = arith.constant 0 : index
      %309 = vector.load %arg10[%c0_90, %c0_91] : memref<8x128xf32, #tpu.memory_space<vmem>>, vector<8x128xf32>
      tpu.vector_store %arg10[%c0_90, %c0_91], %308 {strides = array<i32>} : memref<8x128xf32, #tpu.memory_space<vmem>>, vector<8x128xf32>,
      %c0_i32_92 = arith.constant 0 : i32
      %310 = tpu.memref_slice %arg11[%c0_i32_92] : memref<3x!tpu.dma_semaphore, #tpu.memory_space<semaphore_mem>> -> memref<1x!tpu.dma_semaphore, #tpu.memory_space<semaphore_mem>>
      %311 = tpu.memref_squeeze %310 : memref<1x!tpu.dma_semaphore, #tpu.memory_space<semaphore_mem>> -> memref<!tpu.dma_semaphore, #tpu.memory_space<semaphore_mem>>
      tpu.enqueue_dma source(%arg2 : memref<32x512xf32, #tpu.memory_space<any>>) target(%arg6 : memref<32x512xf32, #tpu.memory_space<vmem>>) target_semaphore(%311 : memref<!tpu.dma_semaphore, #tpu.memory_space<semaphore_mem>>)
      %c1_i32_93 = arith.constant 1 : i32
      %312 = tpu.memref_slice %arg11[%c1_i32_93] : memref<3x!tpu.dma_semaphore, #tpu.memory_space<semaphore_mem>> -> memref<1x!tpu.dma_semaphore, #tpu.memory_space<semaphore_mem>>
      %313 = tpu.memref_squeeze %312 : memref<1x!tpu.dma_semaphore, #tpu.memory_space<semaphore_mem>> -> memref<!tpu.dma_semaphore, #tpu.memory_space<semaphore_mem>>
      tpu.enqueue_dma source(%arg3 : memref<128x512xf32, #tpu.memory_space<any>>) target(%arg7 : memref<128x512xf32, #tpu.memory_space<vmem>>) target_semaphore(%313 : memref<!tpu.dma_semaphore, #tpu.memory_space<semaphore_mem>>)
      %c2_i32_94 = arith.constant 2 : i32
      %314 = tpu.memref_slice %arg11[%c2_i32_94] : memref<3x!tpu.dma_semaphore, #tpu.memory_space<semaphore_mem>> -> memref<1x!tpu.dma_semaphore, #tpu.memory_space<semaphore_mem>>
      %315 = tpu.memref_squeeze %314 : memref<1x!tpu.dma_semaphore, #tpu.memory_space<semaphore_mem>> -> memref<!tpu.dma_semaphore, #tpu.memory_space<semaphore_mem>>
      tpu.enqueue_dma source(%arg4 : memref<1x512xf32, #tpu.memory_space<any>>) target(%arg8 : memref<1x512xf32, #tpu.memory_space<vmem>>) target_semaphore(%315 : memref<!tpu.dma_semaphore, #tpu.memory_space<semaphore_mem>>)
      %c0_i32_95 = arith.constant 0 : i32
      %316 = tpu.memref_slice %arg11[%c0_i32_95] : memref<3x!tpu.dma_semaphore, #tpu.memory_space<semaphore_mem>> -> memref<1x!tpu.dma_semaphore, #tpu.memory_space<semaphore_mem>>
      %317 = tpu.memref_squeeze %316 : memref<1x!tpu.dma_semaphore, #tpu.memory_space<semaphore_mem>> -> memref<!tpu.dma_semaphore, #tpu.memory_space<semaphore_mem>>
      tpu.wait_dma2 semaphore(%317 : memref<!tpu.dma_semaphore, #tpu.memory_space<semaphore_mem>>) src(%arg2 : memref<32x512xf32, #tpu.memory_space<any>>) dst(%arg6 : memref<32x512xf32, #tpu.memory_space<vmem>>)
      %c1_i32_96 = arith.constant 1 : i32
      %318 = tpu.memref_slice %arg11[%c1_i32_96] : memref<3x!tpu.dma_semaphore, #tpu.memory_space<semaphore_mem>> -> memref<1x!tpu.dma_semaphore, #tpu.memory_space<semaphore_mem>>
      %319 = tpu.memref_squeeze %318 : memref<1x!tpu.dma_semaphore, #tpu.memory_space<semaphore_mem>> -> memref<!tpu.dma_semaphore, #tpu.memory_space<semaphore_mem>>
      tpu.wait_dma2 semaphore(%319 : memref<!tpu.dma_semaphore, #tpu.memory_space<semaphore_mem>>) src(%arg3 : memref<128x512xf32, #tpu.memory_space<any>>) dst(%arg7 : memref<128x512xf32, #tpu.memory_space<vmem>>)
      %c2_i32_97 = arith.constant 2 : i32
      %320 = tpu.memref_slice %arg11[%c2_i32_97] : memref<3x!tpu.dma_semaphore, #tpu.memory_space<semaphore_mem>> -> memref<1x!tpu.dma_semaphore, #tpu.memory_space<semaphore_mem>>
      %321 = tpu.memref_squeeze %320 : memref<1x!tpu.dma_semaphore, #tpu.memory_space<semaphore_mem>> -> memref<!tpu.dma_semaphore, #tpu.memory_space<semaphore_mem>>
      tpu.wait_dma2 semaphore(%321 : memref<!tpu.dma_semaphore, #tpu.memory_space<semaphore_mem>>) src(%arg4 : memref<1x512xf32, #tpu.memory_space<any>>) dst(%arg8 : memref<1x512xf32, #tpu.memory_space<vmem>>)
    } else {
    }
    %c0 = arith.constant 0 : index
    %c0_1 = arith.constant 0 : index
    %3 = vector.load %arg6[%c0, %c0_1] : memref<32x512xf32, #tpu.memory_space<vmem>>, vector<32x512xf32>
    %c0_2 = arith.constant 0 : index
    %c0_3 = arith.constant 0 : index
    %4 = vector.load %arg7[%c0_2, %c0_3] : memref<128x512xf32, #tpu.memory_space<vmem>>, vector<128x512xf32>
    %c0_4 = arith.constant 0 : index
    %c0_5 = arith.constant 0 : index
    %5 = vector.load %arg8[%c0_4, %c0_5] : memref<1x512xf32, #tpu.memory_space<vmem>>, vector<1x512xf32>
    %c0_6 = arith.constant 0 : index
    %c0_7 = arith.constant 0 : index
    %6 = vector.load %arg9[%c0_6, %c0_7] : memref<8x128xf32, #tpu.memory_space<vmem>>, vector<8x128xf32>
    %c0_8 = arith.constant 0 : index
    %c0_9 = arith.constant 0 : index
    %7 = vector.load %arg10[%c0_8, %c0_9] : memref<8x128xf32, #tpu.memory_space<vmem>>, vector<8x128xf32>
    %c0_i32_10 = arith.constant 0 : i32
    %8 = arith.index_cast %c0_i32_10 : i32 to index
    %c0_11 = arith.constant 0 : index
    %c0_12 = arith.constant 0 : index
    %9 = vector.load %arg1[%8, %c0_11, %c0_12] : memref<8x8x32xf32, #tpu.memory_space<vmem>>, vector<1x8x32xf32>
    %10 = vector.shape_cast %9 : vector<1x8x32xf32> to vector<8x32xf32>
    %cst = arith.constant dense<0.000000e+00> : vector<8x512xf32>
    %11 = tpu.matmul %10, %3, %cst {dimension_numbers = #tpu.dot_dimension_numbers<[1], [0], [0], [1], [0, 0, 1, 1], [], []>} : vector<8x32xf32>, vector<32x512xf32>, vector<8x512xf32> -> vector<8x512xf32>
    %cst_13 = arith.constant dense<0.000000e+00> : vector<8x512xf32>
    %12 = tpu.matmul %6, %4, %cst_13 {dimension_numbers = #tpu.dot_dimension_numbers<[1], [0], [0], [1], [0, 0, 1, 1], [], []>} : vector<8x128xf32>, vector<128x512xf32>, vector<8x512xf32> -> vector<8x512xf32>
    %13 = arith.addf %11, %12 : vector<8x512xf32>
    %14 = vector.broadcast %5 : vector<1x512xf32> to vector<8x512xf32>
    %15 = arith.addf %13, %14 : vector<8x512xf32>
    %16 = vector.extract_strided_slice %15 {offsets = [0, 0], sizes = [8, 128], strides = [1, 1]} : vector<8x512xf32> to vector<8x128xf32>
    %17 = arith.negf %16 : vector<8x128xf32>
    %18 = math.exp %17 : vector<8x128xf32>
    %cst_14 = arith.constant 1.000000e+00 : f32
    %19 = vector.broadcast %cst_14 : f32 to vector<8x128xf32>
    %20 = arith.addf %19, %18 : vector<8x128xf32>
    %21 = arith.divf %19, %20 : vector<8x128xf32>
    %22 = vector.extract_strided_slice %15 {offsets = [0, 128], sizes = [8, 128], strides = [1, 1]} : vector<8x512xf32> to vector<8x128xf32>
    %23 = arith.negf %22 : vector<8x128xf32>
    %24 = math.exp %23 : vector<8x128xf32>
    %cst_15 = arith.constant 1.000000e+00 : f32
    %25 = vector.broadcast %cst_15 : f32 to vector<8x128xf32>
    %26 = arith.addf %25, %24 : vector<8x128xf32>
    %27 = arith.divf %25, %26 : vector<8x128xf32>
    %28 = vector.extract_strided_slice %15 {offsets = [0, 256], sizes = [8, 128], strides = [1, 1]} : vector<8x512xf32> to vector<8x128xf32>
    %29 = math.tanh %28 : vector<8x128xf32>
    %30 = vector.extract_strided_slice %15 {offsets = [0, 384], sizes = [8, 128], strides = [1, 1]} : vector<8x512xf32> to vector<8x128xf32>
    %31 = arith.negf %30 : vector<8x128xf32>
    %32 = math.exp %31 : vector<8x128xf32>
    %cst_16 = arith.constant 1.000000e+00 : f32
    %33 = vector.broadcast %cst_16 : f32 to vector<8x128xf32>
    %34 = arith.addf %33, %32 : vector<8x128xf32>
    %35 = arith.divf %33, %34 : vector<8x128xf32>
    %36 = arith.mulf %27, %7 : vector<8x128xf32>
    %37 = arith.mulf %21, %29 : vector<8x128xf32>
    %38 = arith.addf %36, %37 : vector<8x128xf32>
    %39 = math.tanh %38 : vector<8x128xf32>
    %40 = arith.mulf %35, %39 : vector<8x128xf32>
    %41 = arith.index_cast %c0_i32_10 : i32 to index
    %c0_17 = arith.constant 0 : index
    %c0_18 = arith.constant 0 : index
    %42 = vector.load %arg5[%41, %c0_17, %c0_18] : memref<8x8x128xf32, #tpu.memory_space<vmem>>, vector<1x8x128xf32>
    %43 = vector.shape_cast %42 : vector<1x8x128xf32> to vector<8x128xf32>
    %44 = vector.shape_cast %40 : vector<8x128xf32> to vector<1x8x128xf32>
    tpu.vector_store %arg5[%41, %c0_17, %c0_18], %44 {strides = array<i32>} : memref<8x8x128xf32, #tpu.memory_space<vmem>>, vector<1x8x128xf32>,
    %c1_i32 = arith.constant 1 : i32
    %45 = arith.index_cast %c1_i32 : i32 to index
    %c0_19 = arith.constant 0 : index
    %c0_20 = arith.constant 0 : index
    %46 = vector.load %arg1[%45, %c0_19, %c0_20] : memref<8x8x32xf32, #tpu.memory_space<vmem>>, vector<1x8x32xf32>
    %47 = vector.shape_cast %46 : vector<1x8x32xf32> to vector<8x32xf32>
    %cst_21 = arith.constant dense<0.000000e+00> : vector<8x512xf32>
    %48 = tpu.matmul %47, %3, %cst_21 {dimension_numbers = #tpu.dot_dimension_numbers<[1], [0], [0], [1], [0, 0, 1, 1], [], []>} : vector<8x32xf32>, vector<32x512xf32>, vector<8x512xf32> -> vector<8x512xf32>
    %cst_22 = arith.constant dense<0.000000e+00> : vector<8x512xf32>
    %49 = tpu.matmul %40, %4, %cst_22 {dimension_numbers = #tpu.dot_dimension_numbers<[1], [0], [0], [1], [0, 0, 1, 1], [], []>} : vector<8x128xf32>, vector<128x512xf32>, vector<8x512xf32> -> vector<8x512xf32>
    %50 = arith.addf %48, %49 : vector<8x512xf32>
    %51 = vector.broadcast %5 : vector<1x512xf32> to vector<8x512xf32>
    %52 = arith.addf %50, %51 : vector<8x512xf32>
    %53 = vector.extract_strided_slice %52 {offsets = [0, 0], sizes = [8, 128], strides = [1, 1]} : vector<8x512xf32> to vector<8x128xf32>
    %54 = arith.negf %53 : vector<8x128xf32>
    %55 = math.exp %54 : vector<8x128xf32>
    %cst_23 = arith.constant 1.000000e+00 : f32
    %56 = vector.broadcast %cst_23 : f32 to vector<8x128xf32>
    %57 = arith.addf %56, %55 : vector<8x128xf32>
    %58 = arith.divf %56, %57 : vector<8x128xf32>
    %59 = vector.extract_strided_slice %52 {offsets = [0, 128], sizes = [8, 128], strides = [1, 1]} : vector<8x512xf32> to vector<8x128xf32>
    %60 = arith.negf %59 : vector<8x128xf32>
    %61 = math.exp %60 : vector<8x128xf32>
    %cst_24 = arith.constant 1.000000e+00 : f32
    %62 = vector.broadcast %cst_24 : f32 to vector<8x128xf32>
    %63 = arith.addf %62, %61 : vector<8x128xf32>
    %64 = arith.divf %62, %63 : vector<8x128xf32>
    %65 = vector.extract_strided_slice %52 {offsets = [0, 256], sizes = [8, 128], strides = [1, 1]} : vector<8x512xf32> to vector<8x128xf32>
    %66 = math.tanh %65 : vector<8x128xf32>
    %67 = vector.extract_strided_slice %52 {offsets = [0, 384], sizes = [8, 128], strides = [1, 1]} : vector<8x512xf32> to vector<8x128xf32>
    %68 = arith.negf %67 : vector<8x128xf32>
    %69 = math.exp %68 : vector<8x128xf32>
    %cst_25 = arith.constant 1.000000e+00 : f32
    %70 = vector.broadcast %cst_25 : f32 to vector<8x128xf32>
    %71 = arith.addf %70, %69 : vector<8x128xf32>
    %72 = arith.divf %70, %71 : vector<8x128xf32>
    %73 = arith.mulf %64, %38 : vector<8x128xf32>
    %74 = arith.mulf %58, %66 : vector<8x128xf32>
    %75 = arith.addf %73, %74 : vector<8x128xf32>
    %76 = math.tanh %75 : vector<8x128xf32>
    %77 = arith.mulf %72, %76 : vector<8x128xf32>
    %78 = arith.index_cast %c1_i32 : i32 to index
    %c0_26 = arith.constant 0 : index
    %c0_27 = arith.constant 0 : index
    %79 = vector.load %arg5[%78, %c0_26, %c0_27] : memref<8x8x128xf32, #tpu.memory_space<vmem>>, vector<1x8x128xf32>
    %80 = vector.shape_cast %79 : vector<1x8x128xf32> to vector<8x128xf32>
    %81 = vector.shape_cast %77 : vector<8x128xf32> to vector<1x8x128xf32>
    tpu.vector_store %arg5[%78, %c0_26, %c0_27], %81 {strides = array<i32>} : memref<8x8x128xf32, #tpu.memory_space<vmem>>, vector<1x8x128xf32>,
    %c2_i32 = arith.constant 2 : i32
    %82 = arith.index_cast %c2_i32 : i32 to index
    %c0_28 = arith.constant 0 : index
    %c0_29 = arith.constant 0 : index
    %83 = vector.load %arg1[%82, %c0_28, %c0_29] : memref<8x8x32xf32, #tpu.memory_space<vmem>>, vector<1x8x32xf32>
    %84 = vector.shape_cast %83 : vector<1x8x32xf32> to vector<8x32xf32>
    %cst_30 = arith.constant dense<0.000000e+00> : vector<8x512xf32>
    %85 = tpu.matmul %84, %3, %cst_30 {dimension_numbers = #tpu.dot_dimension_numbers<[1], [0], [0], [1], [0, 0, 1, 1], [], []>} : vector<8x32xf32>, vector<32x512xf32>, vector<8x512xf32> -> vector<8x512xf32>
    %cst_31 = arith.constant dense<0.000000e+00> : vector<8x512xf32>
    %86 = tpu.matmul %77, %4, %cst_31 {dimension_numbers = #tpu.dot_dimension_numbers<[1], [0], [0], [1], [0, 0, 1, 1], [], []>} : vector<8x128xf32>, vector<128x512xf32>, vector<8x512xf32> -> vector<8x512xf32>
    %87 = arith.addf %85, %86 : vector<8x512xf32>
    %88 = vector.broadcast %5 : vector<1x512xf32> to vector<8x512xf32>
    %89 = arith.addf %87, %88 : vector<8x512xf32>
    %90 = vector.extract_strided_slice %89 {offsets = [0, 0], sizes = [8, 128], strides = [1, 1]} : vector<8x512xf32> to vector<8x128xf32>
    %91 = arith.negf %90 : vector<8x128xf32>
    %92 = math.exp %91 : vector<8x128xf32>
    %cst_32 = arith.constant 1.000000e+00 : f32
    %93 = vector.broadcast %cst_32 : f32 to vector<8x128xf32>
    %94 = arith.addf %93, %92 : vector<8x128xf32>
    %95 = arith.divf %93, %94 : vector<8x128xf32>
    %96 = vector.extract_strided_slice %89 {offsets = [0, 128], sizes = [8, 128], strides = [1, 1]} : vector<8x512xf32> to vector<8x128xf32>
    %97 = arith.negf %96 : vector<8x128xf32>
    %98 = math.exp %97 : vector<8x128xf32>
    %cst_33 = arith.constant 1.000000e+00 : f32
    %99 = vector.broadcast %cst_33 : f32 to vector<8x128xf32>
    %100 = arith.addf %99, %98 : vector<8x128xf32>
    %101 = arith.divf %99, %100 : vector<8x128xf32>
    %102 = vector.extract_strided_slice %89 {offsets = [0, 256], sizes = [8, 128], strides = [1, 1]} : vector<8x512xf32> to vector<8x128xf32>
    %103 = math.tanh %102 : vector<8x128xf32>
    %104 = vector.extract_strided_slice %89 {offsets = [0, 384], sizes = [8, 128], strides = [1, 1]} : vector<8x512xf32> to vector<8x128xf32>
    %105 = arith.negf %104 : vector<8x128xf32>
    %106 = math.exp %105 : vector<8x128xf32>
    %cst_34 = arith.constant 1.000000e+00 : f32
    %107 = vector.broadcast %cst_34 : f32 to vector<8x128xf32>
    %108 = arith.addf %107, %106 : vector<8x128xf32>
    %109 = arith.divf %107, %108 : vector<8x128xf32>
    %110 = arith.mulf %101, %75 : vector<8x128xf32>
    %111 = arith.mulf %95, %103 : vector<8x128xf32>
    %112 = arith.addf %110, %111 : vector<8x128xf32>
    %113 = math.tanh %112 : vector<8x128xf32>
    %114 = arith.mulf %109, %113 : vector<8x128xf32>
    %115 = arith.index_cast %c2_i32 : i32 to index
    %c0_35 = arith.constant 0 : index
    %c0_36 = arith.constant 0 : index
    %116 = vector.load %arg5[%115, %c0_35, %c0_36] : memref<8x8x128xf32, #tpu.memory_space<vmem>>, vector<1x8x128xf32>
    %117 = vector.shape_cast %116 : vector<1x8x128xf32> to vector<8x128xf32>
    %118 = vector.shape_cast %114 : vector<8x128xf32> to vector<1x8x128xf32>
    tpu.vector_store %arg5[%115, %c0_35, %c0_36], %118 {strides = array<i32>} : memref<8x8x128xf32, #tpu.memory_space<vmem>>, vector<1x8x128xf32>,
    %c3_i32 = arith.constant 3 : i32
    %119 = arith.index_cast %c3_i32 : i32 to index
    %c0_37 = arith.constant 0 : index
    %c0_38 = arith.constant 0 : index
    %120 = vector.load %arg1[%119, %c0_37, %c0_38] : memref<8x8x32xf32, #tpu.memory_space<vmem>>, vector<1x8x32xf32>
    %121 = vector.shape_cast %120 : vector<1x8x32xf32> to vector<8x32xf32>
    %cst_39 = arith.constant dense<0.000000e+00> : vector<8x512xf32>
    %122 = tpu.matmul %121, %3, %cst_39 {dimension_numbers = #tpu.dot_dimension_numbers<[1], [0], [0], [1], [0, 0, 1, 1], [], []>} : vector<8x32xf32>, vector<32x512xf32>, vector<8x512xf32> -> vector<8x512xf32>
    %cst_40 = arith.constant dense<0.000000e+00> : vector<8x512xf32>
    %123 = tpu.matmul %114, %4, %cst_40 {dimension_numbers = #tpu.dot_dimension_numbers<[1], [0], [0], [1], [0, 0, 1, 1], [], []>} : vector<8x128xf32>, vector<128x512xf32>, vector<8x512xf32> -> vector<8x512xf32>
    %124 = arith.addf %122, %123 : vector<8x512xf32>
    %125 = vector.broadcast %5 : vector<1x512xf32> to vector<8x512xf32>
    %126 = arith.addf %124, %125 : vector<8x512xf32>
    %127 = vector.extract_strided_slice %126 {offsets = [0, 0], sizes = [8, 128], strides = [1, 1]} : vector<8x512xf32> to vector<8x128xf32>
    %128 = arith.negf %127 : vector<8x128xf32>
    %129 = math.exp %128 : vector<8x128xf32>
    %cst_41 = arith.constant 1.000000e+00 : f32
    %130 = vector.broadcast %cst_41 : f32 to vector<8x128xf32>
    %131 = arith.addf %130, %129 : vector<8x128xf32>
    %132 = arith.divf %130, %131 : vector<8x128xf32>
    %133 = vector.extract_strided_slice %126 {offsets = [0, 128], sizes = [8, 128], strides = [1, 1]} : vector<8x512xf32> to vector<8x128xf32>
    %134 = arith.negf %133 : vector<8x128xf32>
    %135 = math.exp %134 : vector<8x128xf32>
    %cst_42 = arith.constant 1.000000e+00 : f32
    %136 = vector.broadcast %cst_42 : f32 to vector<8x128xf32>
    %137 = arith.addf %136, %135 : vector<8x128xf32>
    %138 = arith.divf %136, %137 : vector<8x128xf32>
    %139 = vector.extract_strided_slice %126 {offsets = [0, 256], sizes = [8, 128], strides = [1, 1]} : vector<8x512xf32> to vector<8x128xf32>
    %140 = math.tanh %139 : vector<8x128xf32>
    %141 = vector.extract_strided_slice %126 {offsets = [0, 384], sizes = [8, 128], strides = [1, 1]} : vector<8x512xf32> to vector<8x128xf32>
    %142 = arith.negf %141 : vector<8x128xf32>
    %143 = math.exp %142 : vector<8x128xf32>
    %cst_43 = arith.constant 1.000000e+00 : f32
    %144 = vector.broadcast %cst_43 : f32 to vector<8x128xf32>
    %145 = arith.addf %144, %143 : vector<8x128xf32>
    %146 = arith.divf %144, %145 : vector<8x128xf32>
    %147 = arith.mulf %138, %112 : vector<8x128xf32>
    %148 = arith.mulf %132, %140 : vector<8x128xf32>
    %149 = arith.addf %147, %148 : vector<8x128xf32>
    %150 = math.tanh %149 : vector<8x128xf32>
    %151 = arith.mulf %146, %150 : vector<8x128xf32>
    %152 = arith.index_cast %c3_i32 : i32 to index
    %c0_44 = arith.constant 0 : index
    %c0_45 = arith.constant 0 : index
    %153 = vector.load %arg5[%152, %c0_44, %c0_45] : memref<8x8x128xf32, #tpu.memory_space<vmem>>, vector<1x8x128xf32>
    %154 = vector.shape_cast %153 : vector<1x8x128xf32> to vector<8x128xf32>
    %155 = vector.shape_cast %151 : vector<8x128xf32> to vector<1x8x128xf32>
    tpu.vector_store %arg5[%152, %c0_44, %c0_45], %155 {strides = array<i32>} : memref<8x8x128xf32, #tpu.memory_space<vmem>>, vector<1x8x128xf32>,
    %c4_i32 = arith.constant 4 : i32
    %156 = arith.index_cast %c4_i32 : i32 to index
    %c0_46 = arith.constant 0 : index
    %c0_47 = arith.constant 0 : index
    %157 = vector.load %arg1[%156, %c0_46, %c0_47] : memref<8x8x32xf32, #tpu.memory_space<vmem>>, vector<1x8x32xf32>
    %158 = vector.shape_cast %157 : vector<1x8x32xf32> to vector<8x32xf32>
    %cst_48 = arith.constant dense<0.000000e+00> : vector<8x512xf32>
    %159 = tpu.matmul %158, %3, %cst_48 {dimension_numbers = #tpu.dot_dimension_numbers<[1], [0], [0], [1], [0, 0, 1, 1], [], []>} : vector<8x32xf32>, vector<32x512xf32>, vector<8x512xf32> -> vector<8x512xf32>
    %cst_49 = arith.constant dense<0.000000e+00> : vector<8x512xf32>
    %160 = tpu.matmul %151, %4, %cst_49 {dimension_numbers = #tpu.dot_dimension_numbers<[1], [0], [0], [1], [0, 0, 1, 1], [], []>} : vector<8x128xf32>, vector<128x512xf32>, vector<8x512xf32> -> vector<8x512xf32>
    %161 = arith.addf %159, %160 : vector<8x512xf32>
    %162 = vector.broadcast %5 : vector<1x512xf32> to vector<8x512xf32>
    %163 = arith.addf %161, %162 : vector<8x512xf32>
    %164 = vector.extract_strided_slice %163 {offsets = [0, 0], sizes = [8, 128], strides = [1, 1]} : vector<8x512xf32> to vector<8x128xf32>
    %165 = arith.negf %164 : vector<8x128xf32>
    %166 = math.exp %165 : vector<8x128xf32>
    %cst_50 = arith.constant 1.000000e+00 : f32
    %167 = vector.broadcast %cst_50 : f32 to vector<8x128xf32>
    %168 = arith.addf %167, %166 : vector<8x128xf32>
    %169 = arith.divf %167, %168 : vector<8x128xf32>
    %170 = vector.extract_strided_slice %163 {offsets = [0, 128], sizes = [8, 128], strides = [1, 1]} : vector<8x512xf32> to vector<8x128xf32>
    %171 = arith.negf %170 : vector<8x128xf32>
    %172 = math.exp %171 : vector<8x128xf32>
    %cst_51 = arith.constant 1.000000e+00 : f32
    %173 = vector.broadcast %cst_51 : f32 to vector<8x128xf32>
    %174 = arith.addf %173, %172 : vector<8x128xf32>
    %175 = arith.divf %173, %174 : vector<8x128xf32>
    %176 = vector.extract_strided_slice %163 {offsets = [0, 256], sizes = [8, 128], strides = [1, 1]} : vector<8x512xf32> to vector<8x128xf32>
    %177 = math.tanh %176 : vector<8x128xf32>
    %178 = vector.extract_strided_slice %163 {offsets = [0, 384], sizes = [8, 128], strides = [1, 1]} : vector<8x512xf32> to vector<8x128xf32>
    %179 = arith.negf %178 : vector<8x128xf32>
    %180 = math.exp %179 : vector<8x128xf32>
    %cst_52 = arith.constant 1.000000e+00 : f32
    %181 = vector.broadcast %cst_52 : f32 to vector<8x128xf32>
    %182 = arith.addf %181, %180 : vector<8x128xf32>
    %183 = arith.divf %181, %182 : vector<8x128xf32>
    %184 = arith.mulf %175, %149 : vector<8x128xf32>
    %185 = arith.mulf %169, %177 : vector<8x128xf32>
    %186 = arith.addf %184, %185 : vector<8x128xf32>
    %187 = math.tanh %186 : vector<8x128xf32>
    %188 = arith.mulf %183, %187 : vector<8x128xf32>
    %189 = arith.index_cast %c4_i32 : i32 to index
    %c0_53 = arith.constant 0 : index
    %c0_54 = arith.constant 0 : index
    %190 = vector.load %arg5[%189, %c0_53, %c0_54] : memref<8x8x128xf32, #tpu.memory_space<vmem>>, vector<1x8x128xf32>
    %191 = vector.shape_cast %190 : vector<1x8x128xf32> to vector<8x128xf32>
    %192 = vector.shape_cast %188 : vector<8x128xf32> to vector<1x8x128xf32>
    tpu.vector_store %arg5[%189, %c0_53, %c0_54], %192 {strides = array<i32>} : memref<8x8x128xf32, #tpu.memory_space<vmem>>, vector<1x8x128xf32>,
    %c5_i32 = arith.constant 5 : i32
    %193 = arith.index_cast %c5_i32 : i32 to index
    %c0_55 = arith.constant 0 : index
    %c0_56 = arith.constant 0 : index
    %194 = vector.load %arg1[%193, %c0_55, %c0_56] : memref<8x8x32xf32, #tpu.memory_space<vmem>>, vector<1x8x32xf32>
    %195 = vector.shape_cast %194 : vector<1x8x32xf32> to vector<8x32xf32>
    %cst_57 = arith.constant dense<0.000000e+00> : vector<8x512xf32>
    %196 = tpu.matmul %195, %3, %cst_57 {dimension_numbers = #tpu.dot_dimension_numbers<[1], [0], [0], [1], [0, 0, 1, 1], [], []>} : vector<8x32xf32>, vector<32x512xf32>, vector<8x512xf32> -> vector<8x512xf32>
    %cst_58 = arith.constant dense<0.000000e+00> : vector<8x512xf32>
    %197 = tpu.matmul %188, %4, %cst_58 {dimension_numbers = #tpu.dot_dimension_numbers<[1], [0], [0], [1], [0, 0, 1, 1], [], []>} : vector<8x128xf32>, vector<128x512xf32>, vector<8x512xf32> -> vector<8x512xf32>
    %198 = arith.addf %196, %197 : vector<8x512xf32>
    %199 = vector.broadcast %5 : vector<1x512xf32> to vector<8x512xf32>
    %200 = arith.addf %198, %199 : vector<8x512xf32>
    %201 = vector.extract_strided_slice %200 {offsets = [0, 0], sizes = [8, 128], strides = [1, 1]} : vector<8x512xf32> to vector<8x128xf32>
    %202 = arith.negf %201 : vector<8x128xf32>
    %203 = math.exp %202 : vector<8x128xf32>
    %cst_59 = arith.constant 1.000000e+00 : f32
    %204 = vector.broadcast %cst_59 : f32 to vector<8x128xf32>
    %205 = arith.addf %204, %203 : vector<8x128xf32>
    %206 = arith.divf %204, %205 : vector<8x128xf32>
    %207 = vector.extract_strided_slice %200 {offsets = [0, 128], sizes = [8, 128], strides = [1, 1]} : vector<8x512xf32> to vector<8x128xf32>
    %208 = arith.negf %207 : vector<8x128xf32>
    %209 = math.exp %208 : vector<8x128xf32>
    %cst_60 = arith.constant 1.000000e+00 : f32
    %210 = vector.broadcast %cst_60 : f32 to vector<8x128xf32>
    %211 = arith.addf %210, %209 : vector<8x128xf32>
    %212 = arith.divf %210, %211 : vector<8x128xf32>
    %213 = vector.extract_strided_slice %200 {offsets = [0, 256], sizes = [8, 128], strides = [1, 1]} : vector<8x512xf32> to vector<8x128xf32>
    %214 = math.tanh %213 : vector<8x128xf32>
    %215 = vector.extract_strided_slice %200 {offsets = [0, 384], sizes = [8, 128], strides = [1, 1]} : vector<8x512xf32> to vector<8x128xf32>
    %216 = arith.negf %215 : vector<8x128xf32>
    %217 = math.exp %216 : vector<8x128xf32>
    %cst_61 = arith.constant 1.000000e+00 : f32
    %218 = vector.broadcast %cst_61 : f32 to vector<8x128xf32>
    %219 = arith.addf %218, %217 : vector<8x128xf32>
    %220 = arith.divf %218, %219 : vector<8x128xf32>
    %221 = arith.mulf %212, %186 : vector<8x128xf32>
    %222 = arith.mulf %206, %214 : vector<8x128xf32>
    %223 = arith.addf %221, %222 : vector<8x128xf32>
    %224 = math.tanh %223 : vector<8x128xf32>
    %225 = arith.mulf %220, %224 : vector<8x128xf32>
    %226 = arith.index_cast %c5_i32 : i32 to index
    %c0_62 = arith.constant 0 : index
    %c0_63 = arith.constant 0 : index
    %227 = vector.load %arg5[%226, %c0_62, %c0_63] : memref<8x8x128xf32, #tpu.memory_space<vmem>>, vector<1x8x128xf32>
    %228 = vector.shape_cast %227 : vector<1x8x128xf32> to vector<8x128xf32>
    %229 = vector.shape_cast %225 : vector<8x128xf32> to vector<1x8x128xf32>
    tpu.vector_store %arg5[%226, %c0_62, %c0_63], %229 {strides = array<i32>} : memref<8x8x128xf32, #tpu.memory_space<vmem>>, vector<1x8x128xf32>,
    %c6_i32 = arith.constant 6 : i32
    %230 = arith.index_cast %c6_i32 : i32 to index
    %c0_64 = arith.constant 0 : index
    %c0_65 = arith.constant 0 : index
    %231 = vector.load %arg1[%230, %c0_64, %c0_65] : memref<8x8x32xf32, #tpu.memory_space<vmem>>, vector<1x8x32xf32>
    %232 = vector.shape_cast %231 : vector<1x8x32xf32> to vector<8x32xf32>
    %cst_66 = arith.constant dense<0.000000e+00> : vector<8x512xf32>
    %233 = tpu.matmul %232, %3, %cst_66 {dimension_numbers = #tpu.dot_dimension_numbers<[1], [0], [0], [1], [0, 0, 1, 1], [], []>} : vector<8x32xf32>, vector<32x512xf32>, vector<8x512xf32> -> vector<8x512xf32>
    %cst_67 = arith.constant dense<0.000000e+00> : vector<8x512xf32>
    %234 = tpu.matmul %225, %4, %cst_67 {dimension_numbers = #tpu.dot_dimension_numbers<[1], [0], [0], [1], [0, 0, 1, 1], [], []>} : vector<8x128xf32>, vector<128x512xf32>, vector<8x512xf32> -> vector<8x512xf32>
    %235 = arith.addf %233, %234 : vector<8x512xf32>
    %236 = vector.broadcast %5 : vector<1x512xf32> to vector<8x512xf32>
    %237 = arith.addf %235, %236 : vector<8x512xf32>
    %238 = vector.extract_strided_slice %237 {offsets = [0, 0], sizes = [8, 128], strides = [1, 1]} : vector<8x512xf32> to vector<8x128xf32>
    %239 = arith.negf %238 : vector<8x128xf32>
    %240 = math.exp %239 : vector<8x128xf32>
    %cst_68 = arith.constant 1.000000e+00 : f32
    %241 = vector.broadcast %cst_68 : f32 to vector<8x128xf32>
    %242 = arith.addf %241, %240 : vector<8x128xf32>
    %243 = arith.divf %241, %242 : vector<8x128xf32>
    %244 = vector.extract_strided_slice %237 {offsets = [0, 128], sizes = [8, 128], strides = [1, 1]} : vector<8x512xf32> to vector<8x128xf32>
    %245 = arith.negf %244 : vector<8x128xf32>
    %246 = math.exp %245 : vector<8x128xf32>
    %cst_69 = arith.constant 1.000000e+00 : f32
    %247 = vector.broadcast %cst_69 : f32 to vector<8x128xf32>
    %248 = arith.addf %247, %246 : vector<8x128xf32>
    %249 = arith.divf %247, %248 : vector<8x128xf32>
    %250 = vector.extract_strided_slice %237 {offsets = [0, 256], sizes = [8, 128], strides = [1, 1]} : vector<8x512xf32> to vector<8x128xf32>
    %251 = math.tanh %250 : vector<8x128xf32>
    %252 = vector.extract_strided_slice %237 {offsets = [0, 384], sizes = [8, 128], strides = [1, 1]} : vector<8x512xf32> to vector<8x128xf32>
    %253 = arith.negf %252 : vector<8x128xf32>
    %254 = math.exp %253 : vector<8x128xf32>
    %cst_70 = arith.constant 1.000000e+00 : f32
    %255 = vector.broadcast %cst_70 : f32 to vector<8x128xf32>
    %256 = arith.addf %255, %254 : vector<8x128xf32>
    %257 = arith.divf %255, %256 : vector<8x128xf32>
    %258 = arith.mulf %249, %223 : vector<8x128xf32>
    %259 = arith.mulf %243, %251 : vector<8x128xf32>
    %260 = arith.addf %258, %259 : vector<8x128xf32>
    %261 = math.tanh %260 : vector<8x128xf32>
    %262 = arith.mulf %257, %261 : vector<8x128xf32>
    %263 = arith.index_cast %c6_i32 : i32 to index
    %c0_71 = arith.constant 0 : index
    %c0_72 = arith.constant 0 : index
    %264 = vector.load %arg5[%263, %c0_71, %c0_72] : memref<8x8x128xf32, #tpu.memory_space<vmem>>, vector<1x8x128xf32>
    %265 = vector.shape_cast %264 : vector<1x8x128xf32> to vector<8x128xf32>
    %266 = vector.shape_cast %262 : vector<8x128xf32> to vector<1x8x128xf32>
    tpu.vector_store %arg5[%263, %c0_71, %c0_72], %266 {strides = array<i32>} : memref<8x8x128xf32, #tpu.memory_space<vmem>>, vector<1x8x128xf32>,
    %c7_i32 = arith.constant 7 : i32
    %267 = arith.index_cast %c7_i32 : i32 to index
    %c0_73 = arith.constant 0 : index
    %c0_74 = arith.constant 0 : index
    %268 = vector.load %arg1[%267, %c0_73, %c0_74] : memref<8x8x32xf32, #tpu.memory_space<vmem>>, vector<1x8x32xf32>
    %269 = vector.shape_cast %268 : vector<1x8x32xf32> to vector<8x32xf32>
    %cst_75 = arith.constant dense<0.000000e+00> : vector<8x512xf32>
    %270 = tpu.matmul %269, %3, %cst_75 {dimension_numbers = #tpu.dot_dimension_numbers<[1], [0], [0], [1], [0, 0, 1, 1], [], []>} : vector<8x32xf32>, vector<32x512xf32>, vector<8x512xf32> -> vector<8x512xf32>
    %cst_76 = arith.constant dense<0.000000e+00> : vector<8x512xf32>
    %271 = tpu.matmul %262, %4, %cst_76 {dimension_numbers = #tpu.dot_dimension_numbers<[1], [0], [0], [1], [0, 0, 1, 1], [], []>} : vector<8x128xf32>, vector<128x512xf32>, vector<8x512xf32> -> vector<8x512xf32>
    %272 = arith.addf %270, %271 : vector<8x512xf32>
    %273 = vector.broadcast %5 : vector<1x512xf32> to vector<8x512xf32>
    %274 = arith.addf %272, %273 : vector<8x512xf32>
    %275 = vector.extract_strided_slice %274 {offsets = [0, 0], sizes = [8, 128], strides = [1, 1]} : vector<8x512xf32> to vector<8x128xf32>
    %276 = arith.negf %275 : vector<8x128xf32>
    %277 = math.exp %276 : vector<8x128xf32>
    %cst_77 = arith.constant 1.000000e+00 : f32
    %278 = vector.broadcast %cst_77 : f32 to vector<8x128xf32>
    %279 = arith.addf %278, %277 : vector<8x128xf32>
    %280 = arith.divf %278, %279 : vector<8x128xf32>
    %281 = vector.extract_strided_slice %274 {offsets = [0, 128], sizes = [8, 128], strides = [1, 1]} : vector<8x512xf32> to vector<8x128xf32>
    %282 = arith.negf %281 : vector<8x128xf32>
    %283 = math.exp %282 : vector<8x128xf32>
    %cst_78 = arith.constant 1.000000e+00 : f32
    %284 = vector.broadcast %cst_78 : f32 to vector<8x128xf32>
    %285 = arith.addf %284, %283 : vector<8x128xf32>
    %286 = arith.divf %284, %285 : vector<8x128xf32>
    %287 = vector.extract_strided_slice %274 {offsets = [0, 256], sizes = [8, 128], strides = [1, 1]} : vector<8x512xf32> to vector<8x128xf32>
    %288 = math.tanh %287 : vector<8x128xf32>
    %289 = vector.extract_strided_slice %274 {offsets = [0, 384], sizes = [8, 128], strides = [1, 1]} : vector<8x512xf32> to vector<8x128xf32>
    %290 = arith.negf %289 : vector<8x128xf32>
    %291 = math.exp %290 : vector<8x128xf32>
    %cst_79 = arith.constant 1.000000e+00 : f32
    %292 = vector.broadcast %cst_79 : f32 to vector<8x128xf32>
    %293 = arith.addf %292, %291 : vector<8x128xf32>
    %294 = arith.divf %292, %293 : vector<8x128xf32>
    %295 = arith.mulf %286, %260 : vector<8x128xf32>
    %296 = arith.mulf %280, %288 : vector<8x128xf32>
    %297 = arith.addf %295, %296 : vector<8x128xf32>
    %298 = math.tanh %297 : vector<8x128xf32>
    %299 = arith.mulf %294, %298 : vector<8x128xf32>
    %300 = arith.index_cast %c7_i32 : i32 to index
    %c0_80 = arith.constant 0 : index
    %c0_81 = arith.constant 0 : index
    %301 = vector.load %arg5[%300, %c0_80, %c0_81] : memref<8x8x128xf32, #tpu.memory_space<vmem>>, vector<1x8x128xf32>
    %302 = vector.shape_cast %301 : vector<1x8x128xf32> to vector<8x128xf32>
    %303 = vector.shape_cast %299 : vector<8x128xf32> to vector<1x8x128xf32>
    tpu.vector_store %arg5[%300, %c0_80, %c0_81], %303 {strides = array<i32>} : memref<8x8x128xf32, #tpu.memory_space<vmem>>, vector<1x8x128xf32>,
    %c8_i32 = arith.constant 8 : i32
    %c0_82 = arith.constant 0 : index
    %c0_83 = arith.constant 0 : index
    %304 = vector.load %arg9[%c0_82, %c0_83] : memref<8x128xf32, #tpu.memory_space<vmem>>, vector<8x128xf32>
    tpu.vector_store %arg9[%c0_82, %c0_83], %299 {strides = array<i32>} : memref<8x128xf32, #tpu.memory_space<vmem>>, vector<8x128xf32>,
    %c0_84 = arith.constant 0 : index
    %c0_85 = arith.constant 0 : index
    %305 = vector.load %arg10[%c0_84, %c0_85] : memref<8x128xf32, #tpu.memory_space<vmem>>, vector<8x128xf32>
    tpu.vector_store %arg10[%c0_84, %c0_85], %297 {strides = array<i32>} : memref<8x128xf32, #tpu.memory_space<vmem>>, vector<8x128xf32>,
    return
  }
  func.func @transform_0(%arg0: i32) -> (i32, i32, i32) {
    %c0_i32 = arith.constant 0 : i32
    %c0_i32_0 = arith.constant 0 : i32
    %c0_i32_1 = arith.constant 0 : i32
    return %arg0, %c0_i32, %c0_i32_0 : i32, i32, i32
  }
  func.func @transform_4(%arg0: i32) -> (i32, i32, i32) {
    %c0_i32 = arith.constant 0 : i32
    %c0_i32_0 = arith.constant 0 : i32
    %c0_i32_1 = arith.constant 0 : i32
    return %arg0, %c0_i32, %c0_i32_0 : i32, i32, i32
  }
}

</mosaic_0001>

<bundles_post_ra>
// kernel: tpu_custom_call.1
= control target key start
LH: loop header
LB: loop body
LE: loop exit
PB: predicated region body
PF: predicated region fallthrough
CT: control target
= control target key end

     0   :  { %9 = vsyncpa [#allocation9], 0  ;;  %s4366_s0 = inlined_call_operand.hbm [shape: f32[8,8,32], index: 0, kind: input, shape index: {}]   ;;  %s4367_s1 = inlined_call_operand.hbm [shape: f32[32,512], index: 1, kind: input, shape index: {}]   ;;  %s4368_s2 = inlined_call_operand.hbm [shape: f32[128,512], index: 2, kind: input, shape index: {}]   ;;  %s4369_s3 = inlined_call_operand.vmem [shape: f32[1,512], index: 3, kind: input, shape index: {}]   ;;  %s4370_s4 = inlined_call_operand.hbm [shape: f32[8,8,128], index: 4, kind: output, shape index: {}]  }
   0x1   :  { %10 = vsyncpa [#allocation10], 0  ;;  %s3763_s15 = smov [#allocation8]   ;;  %s3665_s19 = scalar_lea.hbm %s4366_s0, 1024 }
   0x2   :  { %s16_s16 = sshll.u32 %s3763_s15, 4  ;;  %p3666_p0 = scmp.ne.s32.totalorder %s4366_s0, %s3665_s19  ;;  %s17_s16 = int_to_ptr.vmem [resolvable:$true] %s16_s16 }
   0x3   :  { %p3669_p1 = scmp.lt.u32.totalorder %s3665_s19, %s4366_s0 }
   0x5   :  { %p3671_p2 = pnand %p3669_p1, %p3666_p0 }
   0x7   :  { %3674 = shalt.err (!%p3671_p2)
}
   0x8   :  { %s3675_s24 = scalar_lea.vmem %s17_s16, 1024  ;;  %p3680_p4 = scmp.lt.s32.totalorder %s17_s16, %s17_s16 }
   0x9   :  { %p3676_p3 = scmp.ne.s32.totalorder %s17_s16, %s3675_s24  ;;  %p3681_p5 = scmp.lt.s32.totalorder %s3675_s24, %s3675_s24 }
   0xb   :  { %p3682_p6 = por %p3681_p5, %p3680_p4 }
   0xd   :  { %p3683_p7 = pnand %p3682_p6, %p3676_p3 }
   0xf   :  { %3686 = shalt.err (!%p3683_p7)
}
  0x10   :  { %s3764_s25 = smov 128   ;;  %s3765_s26 = smov 8  }
  0x11   :  { %22 = dma.hbm_to_vmem [thread:$0]  %s4366_s0, 1024, %s17_s16, [#allocation9], %s3764_s25, %s3764_s25, %s3765_s26  }
  0x12   :  { %3753 = dma.done.wait [#allocation9], 1024  }
  0x13   :  { %3754 = vsyncadd [#allocation9], 4294966272  ;;  %s3766_s29 = smov [#allocation2]   ;;  %s3767_s5 = smov [#allocation3]  }
  0x14   :  { %s39_s30 = sshll.u32 %s3766_s29, 4  ;;  %s51_s6 = sshll.u32 %s3767_s5, 4  ;;  %s40_s30 = int_to_ptr.vmem [resolvable:$true] %s39_s30  ;;  %s52_s6 = int_to_ptr.vmem [resolvable:$true] %s51_s6 }
  0x15   :  { %s3687_s9 = scalar_lea.hbm %s4367_s1, 2048 }
  0x16   :  { %p3688_p8 = scmp.ne.s32.totalorder %s4367_s1, %s3687_s9  ;;  %p3691_p9 = scmp.lt.u32.totalorder %s3687_s9, %s4367_s1 }
  0x18   :  { %p3693_p10 = pnand %p3691_p9, %p3688_p8 }
  0x1a   :  { %3696 = shalt.err (!%p3693_p10)  }
  0x1b   :  { %s3697_s0 = scalar_lea.vmem %s40_s30, 2048  ;;  %p3702_p12 = scmp.lt.s32.totalorder %s40_s30, %s40_s30 }
  0x1c   :  { %p3698_p11 = scmp.ne.s32.totalorder %s40_s30, %s3697_s0  ;;  %p3703_p13 = scmp.lt.s32.totalorder %s3697_s0, %s3697_s0 }
  0x1e   :  { %p3704_p0 = por %p3703_p13, %p3702_p12 }
  0x20   :  { %p3705_p1 = pnand %p3704_p0, %p3698_p11 }
  0x22   :  { %3708 = shalt.err (!%p3705_p1)  }
  0x23   :  { %42 = dma.hbm_to_vmem [thread:$0]  %s4367_s1, 2048, %s40_s30, [#allocation7] }
  0x24   :  { %s3709_s18 = scalar_lea.hbm %s4368_s2, 8192 }
  0x25   :  { %p3710_p2 = scmp.ne.s32.totalorder %s4368_s2, %s3709_s18  ;;  %p3713_p3 = scmp.lt.u32.totalorder %s3709_s18, %s4368_s2 }
  0x27   :  { %p3715_p4 = pnand %p3713_p3, %p3710_p2 }
  0x29   :  { %3718 = shalt.err (!%p3715_p4)  }
  0x2a   :  { %s3719_s23 = scalar_lea.vmem %s52_s6, 8192  ;;  %p3724_p6 = scmp.lt.s32.totalorder %s52_s6, %s52_s6 }
  0x2b   :  { %p3720_p5 = scmp.ne.s32.totalorder %s52_s6, %s3719_s23  ;;  %p3725_p7 = scmp.lt.s32.totalorder %s3719_s23, %s3719_s23 }
  0x2d   :  { %p3726_p8 = por %p3725_p7, %p3724_p6 }
  0x2f   :  { %p3727_p9 = pnand %p3726_p8, %p3720_p5 }
  0x31   :  { %3730 = shalt.err (!%p3727_p9)  }
  0x32   :  { %54 = dma.hbm_to_vmem [thread:$0]  %s4368_s2, 8192, %s52_s6, [#allocation7 + $0x1]  ;;  %v73_v0 = vld [vmem:[%s4369_s3] sm:$0xf] }
  0x33   :  { %74 = vst [vmem:[#allocation4] sm:$0xf] %v73_v0 }
  0x34   :  { %99 = vsyncadd [#allocation7 + $0x2], 64 }
  0x35   :  { %3755 = dma.done.wait [#allocation7], 2048 }
  0x36   :  { %3756 = vsyncadd [#allocation7], 4294965248 }
  0x37   :  { %3757 = dma.done.wait [#allocation7 + $0x1], 8192 }
  0x38   :  { %3758 = vsyncadd [#allocation7 + $0x1], 4294959104 }
  0x39   :  { %3759 = dma.done.wait [#allocation7 + $0x2], 64 }
  0x3a   :  { %3760 = vsyncadd [#allocation7 + $0x2], 4294967232  ;;  %v3768_v1 = vmov 0.0   ;;  %v128_v2 = vld [vmem:[#allocation3 + $0x8] sm:$0xff]  ;;  %v127_v4 = vld [vmem:[#allocation3] sm:$0xff]  ;;  %vm337_vm0 = vcmask 261120  }
  0x3b   :  { %259 = vmatprep.mubr.f32.mxu0 %v3768_v1  ;;  %330 = vmatprep.mubr.f32.mxu1 %v3768_v1  ;;  %v132_v3 = vld [vmem:[#allocation3 + $0x28] sm:$0xff]  ;;  %v131_v6 = vld [vmem:[#allocation3 + $0x20] sm:$0xff]  ;;  %v130_v13 = vld [vmem:[#allocation3 + $0x18] sm:$0xff]  ;;  %s3769_s2 = smov [#allocation11]  }
  0x3c   :  { %v3839_v5 = vpack.c.bf16 %v132_v3, %v128_v2  ;;  %v136_v7 = vld [vmem:[#allocation3 + $0x48] sm:$0xff]  ;;  %v3841_v9 = vpack.c.bf16 %v131_v6, %v127_v4  ;;  %v135_v11 = vld [vmem:[#allocation3 + $0x40] sm:$0xff]  ;;  %v134_v14 = vld [vmem:[#allocation3 + $0x38] sm:$0xff]  ;;  %s2773_s3 = sshll.u32 %s3769_s2, 4  ;;  %s2774_s3 = int_to_ptr.vmem [resolvable:$true] %s2773_s3 }
  0x3d   :  { %v140_v8 = vld [vmem:[#allocation3 + $0x68] sm:$0xff]  ;;  %v139_v12 = vld [vmem:[#allocation3 + $0x60] sm:$0xff]  ;;  %v3849_v18 = vpack.c.bf16 %v134_v14, %v130_v13  ;;  %v129_v19 = vld [vmem:[#allocation3 + $0x10] sm:$0xff]  ;;  %s3731_s29 = scalar_lea.vmem %s2774_s3, 1024  ;;  %p3736_p11 = scmp.lt.s32.totalorder %s2774_s3, %s2774_s3 }
  0x3e   :  { %v3843_v10 = vpack.c.bf16 %v140_v8, %v136_v7  ;;  %2859 = vmatprep.subr.bf16.mxu0 %v3839_v5  ;;  %v144_v15 = vld [vmem:[#allocation3 + $0x88] sm:$0xff]  ;;  %v3847_v17 = vpack.c.bf16 %v139_v12, %v135_v11  ;;  %v133_v20 = vld [vmem:[#allocation3 + $0x30] sm:$0xff]  ;;  %v143_v21 = vld [vmem:[#allocation3 + $0x80] sm:$0xff]  ;;  %p3732_p10 = scmp.ne.s32.totalorder %s2774_s3, %s3731_s29  ;;  %p3737_p12 = scmp.lt.s32.totalorder %s3731_s29, %s3731_s29 }
  0x3f   :  { %v148_v16 = vld [vmem:[#allocation3 + $0xa8] sm:$0xff]  ;;  %2861 = vmatpush1.bf16.msra.mxu0 %v3841_v9  ;;  %v3854_v23 = vpack.c.bf16 %v133_v20, %v129_v19  ;;  %v147_v24 = vld [vmem:[#allocation3 + $0xa0] sm:$0xff]  ;;  %v138_v25 = vld [vmem:[#allocation3 + $0x58] sm:$0xff]  ;;  %2891 = vmatprep.subr.bf16.mxu1 %v3849_v18 }
  0x40   :  { %2863 = vmatprep.subr.bf16.mxu0 %v3843_v10  ;;  %v3852_v22 = vpack.c.bf16 %v148_v16, %v144_v15  ;;  %v142_v26 = vld [vmem:[#allocation3 + $0x78] sm:$0xff]  ;;  %v152_v28 = vld [vmem:[#allocation3 + $0xc8] sm:$0xff]  ;;  %v137_v30 = vld [vmem:[#allocation3 + $0x50] sm:$0xff]  ;;  %v3861_v32 = vpack.c.bf16 %v147_v24, %v143_v21  ;;  %p3738_p13 = por %p3737_p12, %p3736_p11 }
  0x41   :  { %v3857_v27 = vpack.c.bf16 %v142_v26, %v138_v25  ;;  %v156_v29 = vld [vmem:[#allocation3 + $0xe8] sm:$0xff]  ;;  %2893 = vmatpush1.bf16.msra.mxu1 %v3854_v23  ;;  %v141_v31 = vld [vmem:[#allocation3 + $0x70] sm:$0xff]  ;;  %v151_v34 = vld [vmem:[#allocation3 + $0xc0] sm:$0xff] }
  0x42   :  { %v3864_v33 = vpack.c.bf16 %v141_v31, %v137_v30  ;;  %v146_v35 = vld [vmem:[#allocation3 + $0x98] sm:$0xff]  ;;  %v3867_v37 = vpack.c.bf16 %v156_v29, %v152_v28  ;;  %v155_v38 = vld [vmem:[#allocation3 + $0xe0] sm:$0xff]  ;;  %v145_v40 = vld [vmem:[#allocation3 + $0x90] sm:$0xff]  ;;  %p3739_p0 = pnand %p3738_p13, %p3732_p10 }
  0x43   :  { %2865 = vmatpush1.bf16.msra.mxu0 %v3847_v17  ;;  %2895 = vmatprep.subr.bf16.mxu1 %v3857_v27  ;;  %v150_v36 = vld [vmem:[#allocation3 + $0xb8] sm:$0xff]  ;;  %v149_v41 = vld [vmem:[#allocation3 + $0xb0] sm:$0xff]  ;;  %v160_v42 = vld [vmem:[#allocation3 + $0x108] sm:$0xff]  ;;  %v3875_v47 = vpack.c.bf16 %v155_v38, %v151_v34 }
  0x44   :  { %2867 = vmatprep.subr.bf16.mxu0 %v3852_v22  ;;  %v3869_v39 = vpack.c.bf16 %v150_v36, %v146_v35  ;;  %v164_v43 = vld [vmem:[#allocation3 + $0x128] sm:$0xff]  ;;  %v154_v44 = vld [vmem:[#allocation3 + $0xd8] sm:$0xff]  ;;  %v3872_v45 = vpack.c.bf16 %v149_v41, %v145_v40  ;;  %v159_v48 = vld [vmem:[#allocation3 + $0x100] sm:$0xff] }
  0x45   :  { %2897 = vmatpush1.bf16.msra.mxu1 %v3864_v33  ;;  %v158_v46 = vld [vmem:[#allocation3 + $0xf8] sm:$0xff]  ;;  %v153_v50 = vld [vmem:[#allocation3 + $0xd0] sm:$0xff]  ;;  %v3881_v52 = vpack.c.bf16 %v164_v43, %v160_v42  ;;  %v163_v53 = vld [vmem:[#allocation3 + $0x120] sm:$0xff] }
  0x46   :  { %2899 = vmatprep.subr.bf16.mxu1 %v3869_v39  ;;  %v3878_v49 = vpack.c.bf16 %v158_v46, %v154_v44  ;;  %v157_v51 = vld [vmem:[#allocation3 + $0xf0] sm:$0xff]  ;;  %v162_v54 = vld [vmem:[#allocation3 + $0x118] sm:$0xff]  ;;  %v168_v56 = vld [vmem:[#allocation3 + $0x148] sm:$0xff]  ;;  %v3887_v59 = vpack.c.bf16 %v163_v53, %v159_v48 }
  0x47   :  { %2869 = vmatpush1.bf16.msra.mxu0 %v3861_v32  ;;  %v166_v55 = vld [vmem:[#allocation3 + $0x138] sm:$0xff]  ;;  %v172_v57 = vld [vmem:[#allocation3 + $0x168] sm:$0xff]  ;;  %v3884_v58 = vpack.c.bf16 %v157_v51, %v153_v50  ;;  %v167_v60 = vld [vmem:[#allocation3 + $0x140] sm:$0xff] }
  0x48   :  { %2871 = vmatprep.subr.bf16.mxu0 %v3867_v37  ;;  %v3890_v61 = vpack.c.bf16 %v166_v55, %v162_v54  ;;  %v161_v62 = vld [vmem:[#allocation3 + $0x110] sm:$0xff]  ;;  %v3893_v0 = vpack.c.bf16 %v172_v57, %v168_v56  ;;  %v171_v2 = vld [vmem:[#allocation3 + $0x160] sm:$0xff]  ;;  %v170_v3 = vld [vmem:[#allocation3 + $0x158] sm:$0xff] }
  0x49   :  { %2901 = vmatpush1.bf16.msra.mxu1 %v3872_v45  ;;  %v165_v63 = vld [vmem:[#allocation3 + $0x130] sm:$0xff]  ;;  %v174_v4 = vld [vmem:[#allocation3 + $0x178] sm:$0xff]  ;;  %v176_v6 = vld [vmem:[#allocation3 + $0x188] sm:$0xff]  ;;  %v3899_v11 = vpack.c.bf16 %v171_v2, %v167_v60 }
  0x4a   :  { %2903 = vmatprep.subr.bf16.mxu1 %v3878_v49  ;;  %v180_v7 = vld [vmem:[#allocation3 + $0x1a8] sm:$0xff]  ;;  %v3896_v8 = vpack.c.bf16 %v165_v63, %v161_v62  ;;  %v175_v12 = vld [vmem:[#allocation3 + $0x180] sm:$0xff]  ;;  %v3902_v13 = vpack.c.bf16 %v174_v4, %v170_v3  ;;  %v169_v14 = vld [vmem:[#allocation3 + $0x150] sm:$0xff] }
  0x4b   :  { %2873 = vmatpush1.bf16.msra.mxu0 %v3875_v47  ;;  %v173_v15 = vld [vmem:[#allocation3 + $0x170] sm:$0xff]  ;;  %v3905_v16 = vpack.c.bf16 %v180_v7, %v176_v6  ;;  %v179_v19 = vld [vmem:[#allocation3 + $0x1a0] sm:$0xff]  ;;  %v178_v20 = vld [vmem:[#allocation3 + $0x198] sm:$0xff] }
  0x4c   :  { %2875 = vmatprep.subr.bf16.mxu0 %v3881_v52  ;;  %v182_v21 = vld [vmem:[#allocation3 + $0x1b8] sm:$0xff]  ;;  %v184_v24 = vld [vmem:[#allocation3 + $0x1c8] sm:$0xff]  ;;  %v3908_v26 = vpack.c.bf16 %v173_v15, %v169_v14  ;;  %v3911_v28 = vpack.c.bf16 %v179_v19, %v175_v12  ;;  %v183_v29 = vld [vmem:[#allocation3 + $0x1c0] sm:$0xff] }
  0x4d   :  { %2905 = vmatpush1.bf16.msra.mxu1 %v3884_v58  ;;  %v188_v25 = vld [vmem:[#allocation3 + $0x1e8] sm:$0xff]  ;;  %v3914_v30 = vpack.c.bf16 %v182_v21, %v178_v20  ;;  %v177_v31 = vld [vmem:[#allocation3 + $0x190] sm:$0xff]  ;;  %v187_v36 = vld [vmem:[#allocation3 + $0x1e0] sm:$0xff] }
  0x4e   :  { %2907 = vmatprep.subr.bf16.mxu1 %v3890_v61  ;;  %v181_v34 = vld [vmem:[#allocation3 + $0x1b0] sm:$0xff]  ;;  %v3917_v35 = vpack.c.bf16 %v188_v25, %v184_v24  ;;  %v186_v38 = vld [vmem:[#allocation3 + $0x1d8] sm:$0xff]  ;;  %v112_v41 = vld [vmem:[#allocation2 + $0x8] sm:$0xff]  ;;  %v3923_v44 = vpack.c.bf16 %v187_v36, %v183_v29 }
  0x4f   :  { %2877 = vmatpush1.bf16.msra.mxu0 %v3887_v59  ;;  %v190_v40 = vld [vmem:[#allocation3 + $0x1f8] sm:$0xff]  ;;  %v116_v42 = vld [vmem:[#allocation2 + $0x28] sm:$0xff]  ;;  %v3920_v43 = vpack.c.bf16 %v181_v34, %v177_v31  ;;  %v185_v48 = vld [vmem:[#allocation3 + $0x1d0] sm:$0xff]  ;;  %v484_v34 = vlaneseq }
  0x50   :  { %2879 = vmatprep.subr.bf16.mxu0 %v3893_v0  ;;  %v3926_v46 = vpack.c.bf16 %v190_v40, %v186_v38  ;;  %v189_v50 = vld [vmem:[#allocation3 + $0x1f0] sm:$0xff]  ;;  %v3929_v51 = vpack.c.bf16 %v116_v42, %v112_v41  ;;  %v111_v53 = vld [vmem:[#allocation2] sm:$0xff]  ;;  %v120_v55 = vld [vmem:[#allocation2 + $0x48] sm:$0xff] }
  0x51   :  { %2909 = vmatpush1.bf16.msra.mxu1 %v3896_v8  ;;  %v115_v54 = vld [vmem:[#allocation2 + $0x20] sm:$0xff]  ;;  %v124_v56 = vld [vmem:[#allocation2 + $0x68] sm:$0xff]  ;;  %v114_v57 = vld [vmem:[#allocation2 + $0x18] sm:$0xff]  ;;  %v3932_v62 = vpack.c.bf16 %v189_v50, %v185_v48  ;;  %v485_v36 = vshrl.u32 %v484_v34, 7 }
  0x52   :  { %2911 = vmatprep.subr.bf16.mxu1 %v3902_v13  ;;  %v118_v60 = vld [vmem:[#allocation2 + $0x38] sm:$0xff]  ;;  %v3935_v63 = vpack.c.bf16 %v115_v54, %v111_v53  ;;  %v119_v2 = vld [vmem:[#allocation2 + $0x40] sm:$0xff]  ;;  %v113_v3 = vld [vmem:[#allocation2 + $0x10] sm:$0xff]  ;;  %v3939_v6 = vpack.c.bf16 %v124_v56, %v120_v55 }
  0x53   :  { %2881 = vmatpush1.bf16.msra.mxu0 %v3899_v11  ;;  %v117_v4 = vld [vmem:[#allocation2 + $0x30] sm:$0xff]  ;;  %v123_v7 = vld [vmem:[#allocation2 + $0x60] sm:$0xff]  ;;  %v3941_v12 = vpack.c.bf16 %v118_v60, %v114_v57  ;;  %v122_v14 = vld [vmem:[#allocation2 + $0x58] sm:$0xff]  ;;  %v486_v38 = vsub.s32 0, %v485_v36  ;;  %v490_v41 = vsub.s32 1, %v485_v36  ;;  %v498_v53 = vsub.s32 3, %v485_v36 }
  0x54   :  { %2883 = vmatprep.subr.bf16.mxu0 %v3905_v16  ;;  %v126_v15 = vld [vmem:[#allocation2 + $0x78] sm:$0xff]  ;;  %v3945_v19 = vpack.c.bf16 %v117_v4, %v113_v3  ;;  %v3948_v20 = vpack.c.bf16 %v123_v7, %v119_v2  ;;  %v121_v24 = vld [vmem:[#allocation2 + $0x50] sm:$0xff]  ;;  %v194_v31 = vld [vmem:[#allocation8] sm:$0xff]  ;;  %v494_v7 = vsub.s32 2, %v485_v36 }
  0x55   :  { %2913 = vmatpush1.bf16.msra.mxu1 %v3908_v26  ;;  %v3951_v21 = vpack.c.bf16 %v126_v15, %v122_v14  ;;  %v125_v25 = vld [vmem:[#allocation2 + $0x70] sm:$0xff]  ;;  %v191_v40 = vld [vmem:[#allocation4] sm:$0xf] }
  0x56   :  { %2915 = vmatprep.subr.bf16.mxu1 %v3914_v30  ;;  %v3957_v29 = vpack.c.bf16 %v125_v25, %v121_v24  ;;  %v4001_v42 = vrot.slane %v191_v40, %v486_v38  ;;  %v4003_v48 = vrot.slane %v191_v40, %v490_v41  ;;  %v4007_v4 = vrot.slane %v191_v40, %v498_v53 }
  0x57   :  { %2885 = vmatpush1.bf16.msra.mxu0 %v3911_v28  ;;  %v4010_v15 = vrot.slane %v191_v40, %v494_v7  ;;  %v534_v7 = vld [vmem:[#allocation8 + $0x8] sm:$0xff] }
  0x58   :  { %2887 = vmatprep.subr.bf16.mxu0 %v3917_v35 }
  0x59   :  { %2917 = vmatpush1.bf16.msra.mxu1 %v3920_v43 }
  0x5a   :  { %2919 = vmatprep.subr.bf16.mxu1 %v3926_v46 }
  0x5b   :  { %2889 = vmatpush1.bf16.msra.mxu0 %v3923_v44 }
  0x5c   :  { %2923 = vmatprep.subr.bf16.mxu0 %v3929_v51 }
  0x5d   :  { %2921 = vmatpush1.bf16.msra.mxu1 %v3932_v62 }
  0x5e   :  { %260 = vmatmul.mubr.f32.vlgmr.msra.gmra.mrb[0].mxu0 %v3768_v1  ;;  %2931 = vmatprep.subr.bf16.mxu1 %v3941_v12 }
  0x5f   :  { %2925 = vmatpush1.bf16.msra.mxu0 %v3935_v63  ;;  %405 = vmatprep.mubr.f32.mxu0 %v3768_v1 }
  0x60   :  { %2927 = vmatprep.subr.bf16.mxu0 %v3939_v6  ;;  %331 = vmatmul.mubr.f32.vlgmr.msra.gmra.mrb[0].mxu1 %v3768_v1 }
  0x61   :  { %2933 = vmatpush1.bf16.msra.mxu1 %v3945_v19  ;;  %476 = vmatprep.mubr.f32.mxu1 %v3768_v1 }
  0x62   :  { %2935 = vmatprep.subr.bf16.mxu1 %v3951_v21 }
  0x63   :  { %2929 = vmatpush1.bf16.msra.mxu0 %v3948_v20 }
  0x64   :  { %2939 = vmatprep.subr.bf16.mxu0 %v3839_v5 }
  0x65   :  { %2937 = vmatpush1.bf16.msra.mxu1 %v3957_v29 }
  0x66   :  { %2815 = vmatmul.mubr.msk.f32.vlgmr.msra.gmra.mrb[0].mxu0 %vm337_vm0, %v194_v31  ;;  %2971 = vmatprep.subr.bf16.mxu1 %v3849_v18 }
  0x67   :  { %2941 = vmatpush1.bf16.msra.mxu0 %v3841_v9  ;;  %599 = vmatprep.mubr.f32.mxu0 %v3768_v1 }
  0x68   :  { %2943 = vmatprep.subr.bf16.mxu0 %v3843_v10  ;;  %2816 = vmatmul.mubr.msk.f32.vlgmr.msra.gmra.mrb[0].mxu1 %vm337_vm0, %v194_v31 }
  0x69   :  { %2973 = vmatpush1.bf16.msra.mxu1 %v3854_v23  ;;  %670 = vmatprep.mubr.f32.mxu1 %v3768_v1 }
  0x6a   :  { %2975 = vmatprep.subr.bf16.mxu1 %v3857_v27 }
  0x6b   :  { %2945 = vmatpush1.bf16.msra.mxu0 %v3847_v17 }
  0x6c   :  { %2947 = vmatprep.subr.bf16.mxu0 %v3852_v22 }
  0x6d   :  { %2977 = vmatpush1.bf16.msra.mxu1 %v3864_v33 }
  0x6e   :  { %2979 = vmatprep.subr.bf16.mxu1 %v3869_v39 }
  0x6f   :  { %2949 = vmatpush1.bf16.msra.mxu0 %v3861_v32 }
  0x70   :  { %2951 = vmatprep.subr.bf16.mxu0 %v3867_v37 }
  0x71   :  { %2981 = vmatpush1.bf16.msra.mxu1 %v3872_v45 }
  0x72   :  { %2983 = vmatprep.subr.bf16.mxu1 %v3878_v49 }
  0x73   :  { %2953 = vmatpush1.bf16.msra.mxu0 %v3875_v47 }
  0x74   :  { %2955 = vmatprep.subr.bf16.mxu0 %v3881_v52 }
  0x75   :  { %2985 = vmatpush1.bf16.msra.mxu1 %v3884_v58 }
  0x76   :  { %2987 = vmatprep.subr.bf16.mxu1 %v3890_v61 }
  0x77   :  { %2957 = vmatpush1.bf16.msra.mxu0 %v3887_v59 }
  0x78   :  { %2959 = vmatprep.subr.bf16.mxu0 %v3893_v0 }
  0x79   :  { %2989 = vmatpush1.bf16.msra.mxu1 %v3896_v8 }
  0x7a   :  { %2991 = vmatprep.subr.bf16.mxu1 %v3902_v13 }
  0x7b   :  { %2961 = vmatpush1.bf16.msra.mxu0 %v3899_v11 }
  0x7c   :  { %2963 = vmatprep.subr.bf16.mxu0 %v3905_v16 }
  0x7d   :  { %2993 = vmatpush1.bf16.msra.mxu1 %v3908_v26 }
  0x7e   :  { %2995 = vmatprep.subr.bf16.mxu1 %v3914_v30 }
  0x7f   :  { %2965 = vmatpush1.bf16.msra.mxu0 %v3911_v28 }
  0x80   :  { %2967 = vmatprep.subr.bf16.mxu0 %v3917_v35 }
  0x81   :  { %2997 = vmatpush1.bf16.msra.mxu1 %v3920_v43 }
  0x82   :  { %2999 = vmatprep.subr.bf16.mxu1 %v3926_v46 }
  0x83   :  { %2969 = vmatpush1.bf16.msra.mxu0 %v3923_v44 }
  0x84   :  { %3003 = vmatprep.subr.bf16.mxu0 %v3929_v51 }
  0x85   :  { %3001 = vmatpush1.bf16.msra.mxu1 %v3932_v62 }
  0x86   :  { %3011 = vmatprep.subr.bf16.mxu1 %v3941_v12 }
 0x139   :  { %v407_v50 = vpop.f32.mrb[0].mxu0 }
 0x13a   :  { %v504_v54 = vadd.f32 %v4001_v42, %v407_v50  ;;  %v409_v55 = vpop.f32.mrb[1].mxu0 }
 0x13b   :  { %v505_v56 = vadd.f32 %v4003_v48, %v409_v55  ;;  %v478_v60 = vpop.f32.mrb[0].mxu1 }
 0x13c   :  { %v2817_v57 = vmul.f32 -1.442695, %v504_v54  ;;  %v480_v3 = vpop.f32.mrb[1].mxu1  ;;  %v506_v25 = vadd.f32 %v4010_v15, %v478_v60 }
 0x13d   :  { %v2818_v2 = vmul.f32 -1.442695, %v505_v56  ;;  %v507_v14 = vadd.f32 %v4007_v4, %v480_v3 }
 0x13e   :  { %3537 = vpow2.f32 %v2817_v57 }
 0x13f   :  { %3539 = vpow2.f32 %v2818_v2  ;;  %v2819_v24 = vmul.f32 -1.442695, %v507_v14 }
 0x141   :  { %3541 = vpow2.f32 %v2819_v24 }
 0x142   :  { %3543 = vtanh.f32 %v506_v25 }
 0x148   :  { %v3538_v31 = vpop.eup %3537 }
 0x149   :  { %v3540_v34 = vpop.eup %3539  ;;  %v511_v38 = vadd.f32 1.0, %v3538_v31 }
 0x14a   :  { %v517_v41 = vadd.f32 1.0, %v3540_v34 }
 0x14b   :  { %3545 = vrcp.f32 %v511_v38  ;;  %v3542_v50 = vpop.eup %3541 }
 0x14c   :  { %3547 = vrcp.f32 %v517_v41  ;;  %v3544_v53 = vpop.eup %3543  ;;  %v524_v56 = vadd.f32 1.0, %v3542_v50 }
 0x14e   :  { %3549 = vrcp.f32 %v524_v56 }
 0x155   :  { %v3546_v54 = vpop.eup %3545 }
 0x156   :  { %v3548_v36 = vpop.eup %3547  ;;  %v528_v55 = vmul.f32 %v3546_v54, %v3544_v53 }
 0x157   :  { %v527_v57 = vmul.f32 0.0, %v3548_v36 }
 0x158   :  { %v3550_v60 = vpop.eup %3549 }
 0x159   :  { %v4013_v40 = vadd.f32 %v528_v55, %v527_v57 }
 0x15b   :  { %3551 = vtanh.f32 %v4013_v40 }
 0x165   :  { %v3552_v2 = vpop.eup %3551 }
 0x166   :  { %v531_v3 = vmul.f32 %v3552_v2, %v3550_v60 }
 0x168   :  { %532 = vst [vmem:[#allocation11] sm:$0xff] %v531_v3  ;;  %600 = vmatmul.mubr.f32.vlgmr.msra.gmra.mrb[2].mxu0 %v531_v3  ;;  %671 = vmatmul.mubr.f32.vlgmr.msra.gmra.mrb[2].mxu1 %v531_v3 }
 0x169   :  { %3005 = vmatpush1.bf16.msra.mxu0 %v3935_v63  ;;  %3013 = vmatpush1.bf16.msra.mxu1 %v3945_v19 }
 0x16a   :  { %3007 = vmatprep.subr.bf16.mxu0 %v3939_v6  ;;  %3015 = vmatprep.subr.bf16.mxu1 %v3951_v21 }
 0x16b   :  { %744 = vmatprep.mubr.f32.mxu0 %v3768_v1  ;;  %815 = vmatprep.mubr.f32.mxu1 %v3768_v1 }
 0x16d   :  { %3009 = vmatpush1.bf16.msra.mxu0 %v3948_v20  ;;  %3017 = vmatpush1.bf16.msra.mxu1 %v3957_v29 }
 0x16e   :  { %3019 = vmatprep.subr.bf16.mxu0 %v3839_v5  ;;  %3051 = vmatprep.subr.bf16.mxu1 %v3849_v18 }
 0x170   :  { %2820 = vmatmul.mubr.msk.f32.vlgmr.msra.gmra.mrb[2].mxu0 %vm337_vm0, %v534_v7  ;;  %2821 = vmatmul.mubr.msk.f32.vlgmr.msra.gmra.mrb[2].mxu1 %vm337_vm0, %v534_v7 }
 0x171   :  { %3021 = vmatpush1.bf16.msra.mxu0 %v3841_v9  ;;  %3053 = vmatpush1.bf16.msra.mxu1 %v3854_v23 }
 0x172   :  { %3023 = vmatprep.subr.bf16.mxu0 %v3843_v10  ;;  %3055 = vmatprep.subr.bf16.mxu1 %v3857_v27 }
 0x173   :  { %918 = vmatprep.mubr.f32.mxu0 %v3768_v1  ;;  %989 = vmatprep.mubr.f32.mxu1 %v3768_v1 }
 0x175   :  { %3025 = vmatpush1.bf16.msra.mxu0 %v3847_v17  ;;  %3057 = vmatpush1.bf16.msra.mxu1 %v3864_v33 }
 0x176   :  { %3027 = vmatprep.subr.bf16.mxu0 %v3852_v22  ;;  %3059 = vmatprep.subr.bf16.mxu1 %v3869_v39 }
 0x179   :  { %3029 = vmatpush1.bf16.msra.mxu0 %v3861_v32  ;;  %3061 = vmatpush1.bf16.msra.mxu1 %v3872_v45 }
 0x17a   :  { %3031 = vmatprep.subr.bf16.mxu0 %v3867_v37  ;;  %3063 = vmatprep.subr.bf16.mxu1 %v3878_v49 }
 0x17d   :  { %3033 = vmatpush1.bf16.msra.mxu0 %v3875_v47  ;;  %3065 = vmatpush1.bf16.msra.mxu1 %v3884_v58 }
 0x17e   :  { %3035 = vmatprep.subr.bf16.mxu0 %v3881_v52  ;;  %3067 = vmatprep.subr.bf16.mxu1 %v3890_v61 }
 0x181   :  { %3037 = vmatpush1.bf16.msra.mxu0 %v3887_v59  ;;  %3069 = vmatpush1.bf16.msra.mxu1 %v3896_v8 }
 0x182   :  { %3039 = vmatprep.subr.bf16.mxu0 %v3893_v0  ;;  %3071 = vmatprep.subr.bf16.mxu1 %v3902_v13 }
 0x185   :  { %3041 = vmatpush1.bf16.msra.mxu0 %v3899_v11  ;;  %3073 = vmatpush1.bf16.msra.mxu1 %v3908_v26 }
 0x186   :  { %3043 = vmatprep.subr.bf16.mxu0 %v3905_v16  ;;  %3075 = vmatprep.subr.bf16.mxu1 %v3914_v30 }
 0x189   :  { %3045 = vmatpush1.bf16.msra.mxu0 %v3911_v28  ;;  %3077 = vmatpush1.bf16.msra.mxu1 %v3920_v43 }
 0x18a   :  { %3047 = vmatprep.subr.bf16.mxu0 %v3917_v35  ;;  %3079 = vmatprep.subr.bf16.mxu1 %v3926_v46 }
 0x18d   :  { %3049 = vmatpush1.bf16.msra.mxu0 %v3923_v44  ;;  %3081 = vmatpush1.bf16.msra.mxu1 %v3932_v62 }
 0x18e   :  { %3083 = vmatprep.subr.bf16.mxu0 %v3929_v51  ;;  %3091 = vmatprep.subr.bf16.mxu1 %v3941_v12 }
 0x243   :  { %v746_v14 = vpop.f32.mrb[2].mxu0  ;;  %v817_v24 = vpop.f32.mrb[2].mxu1 }
 0x244   :  { %v822_v25 = vadd.f32 %v746_v14, %v4001_v42  ;;  %v748_v31 = vpop.f32.mrb[3].mxu0  ;;  %v819_v34 = vpop.f32.mrb[3].mxu1  ;;  %v824_v36 = vadd.f32 %v817_v24, %v4010_v15 }
 0x245   :  { %v823_v38 = vadd.f32 %v748_v31, %v4003_v48  ;;  %v825_v53 = vadd.f32 %v819_v34, %v4007_v4 }
 0x246   :  { %v2822_v41 = vmul.f32 -1.442695, %v822_v25 }
 0x247   :  { %v2823_v50 = vmul.f32 -1.442695, %v823_v38  ;;  %v2824_v54 = vmul.f32 -1.442695, %v825_v53 }
 0x248   :  { %3553 = vpow2.f32 %v2822_v41 }
 0x249   :  { %3555 = vpow2.f32 %v2823_v50 }
 0x24a   :  { %3557 = vpow2.f32 %v2824_v54 }
 0x24b   :  { %3559 = vtanh.f32 %v824_v36 }
 0x252   :  { %v3554_v55 = vpop.eup %3553 }
 0x253   :  { %v3556_v56 = vpop.eup %3555  ;;  %v829_v57 = vadd.f32 1.0, %v3554_v55 }
 0x254   :  { %v835_v60 = vadd.f32 1.0, %v3556_v56  ;;  %v3558_v2 = vpop.eup %3557 }
 0x255   :  { %3561 = vrcp.f32 %v829_v57  ;;  %v3560_v3 = vpop.eup %3559  ;;  %v842_v31 = vadd.f32 1.0, %v3558_v2 }
 0x256   :  { %3563 = vrcp.f32 %v835_v60 }
 0x257   :  { %3565 = vrcp.f32 %v842_v31 }
 0x25f   :  { %v3562_v7 = vpop.eup %3561 }
 0x260   :  { %v3564_v14 = vpop.eup %3563  ;;  %v846_v25 = vmul.f32 %v3562_v7, %v3560_v3 }
 0x261   :  { %v845_v38 = vmul.f32 %v3564_v14, %v4013_v40  ;;  %v3566_v24 = vpop.eup %3565  ;;  %v853_v40 = vld [vmem:[#allocation8 + $0x10] sm:$0xff] }
 0x263   :  { %v4067_v34 = vadd.f32 %v846_v25, %v845_v38 }
 0x265   :  { %3567 = vtanh.f32 %v4067_v34 }
 0x26f   :  { %v3568_v41 = vpop.eup %3567 }
 0x270   :  { %v849_v50 = vmul.f32 %v3568_v41, %v3566_v24 }
 0x272   :  { %851 = vst [vmem:[#allocation11 + $0x8] sm:$0xff] %v849_v50  ;;  %919 = vmatmul.mubr.f32.vlgmr.msra.gmra.mrb[4].mxu0 %v849_v50  ;;  %990 = vmatmul.mubr.f32.vlgmr.msra.gmra.mrb[4].mxu1 %v849_v50 }
 0x273   :  { %3085 = vmatpush1.bf16.msra.mxu0 %v3935_v63  ;;  %3093 = vmatpush1.bf16.msra.mxu1 %v3945_v19 }
 0x274   :  { %3087 = vmatprep.subr.bf16.mxu0 %v3939_v6  ;;  %3095 = vmatprep.subr.bf16.mxu1 %v3951_v21 }
 0x275   :  { %1063 = vmatprep.mubr.f32.mxu0 %v3768_v1  ;;  %1134 = vmatprep.mubr.f32.mxu1 %v3768_v1 }
 0x277   :  { %3089 = vmatpush1.bf16.msra.mxu0 %v3948_v20  ;;  %3097 = vmatpush1.bf16.msra.mxu1 %v3957_v29 }
 0x278   :  { %3099 = vmatprep.subr.bf16.mxu0 %v3839_v5  ;;  %3131 = vmatprep.subr.bf16.mxu1 %v3849_v18 }
 0x27a   :  { %2825 = vmatmul.mubr.msk.f32.vlgmr.msra.gmra.mrb[4].mxu0 %vm337_vm0, %v853_v40  ;;  %2826 = vmatmul.mubr.msk.f32.vlgmr.msra.gmra.mrb[4].mxu1 %vm337_vm0, %v853_v40 }
 0x27b   :  { %3101 = vmatpush1.bf16.msra.mxu0 %v3841_v9  ;;  %3133 = vmatpush1.bf16.msra.mxu1 %v3854_v23 }
 0x27c   :  { %3103 = vmatprep.subr.bf16.mxu0 %v3843_v10  ;;  %3135 = vmatprep.subr.bf16.mxu1 %v3857_v27 }
 0x27d   :  { %1237 = vmatprep.mubr.f32.mxu0 %v3768_v1  ;;  %1308 = vmatprep.mubr.f32.mxu1 %v3768_v1 }
 0x27f   :  { %3105 = vmatpush1.bf16.msra.mxu0 %v3847_v17  ;;  %3137 = vmatpush1.bf16.msra.mxu1 %v3864_v33 }
 0x280   :  { %3107 = vmatprep.subr.bf16.mxu0 %v3852_v22  ;;  %3139 = vmatprep.subr.bf16.mxu1 %v3869_v39 }
 0x283   :  { %3109 = vmatpush1.bf16.msra.mxu0 %v3861_v32  ;;  %3141 = vmatpush1.bf16.msra.mxu1 %v3872_v45 }
 0x284   :  { %3111 = vmatprep.subr.bf16.mxu0 %v3867_v37  ;;  %3143 = vmatprep.subr.bf16.mxu1 %v3878_v49 }
 0x287   :  { %3113 = vmatpush1.bf16.msra.mxu0 %v3875_v47  ;;  %3145 = vmatpush1.bf16.msra.mxu1 %v3884_v58 }
 0x288   :  { %3115 = vmatprep.subr.bf16.mxu0 %v3881_v52  ;;  %3147 = vmatprep.subr.bf16.mxu1 %v3890_v61 }
 0x28b   :  { %3117 = vmatpush1.bf16.msra.mxu0 %v3887_v59  ;;  %3149 = vmatpush1.bf16.msra.mxu1 %v3896_v8 }
 0x28c   :  { %3119 = vmatprep.subr.bf16.mxu0 %v3893_v0  ;;  %3151 = vmatprep.subr.bf16.mxu1 %v3902_v13 }
 0x28f   :  { %3121 = vmatpush1.bf16.msra.mxu0 %v3899_v11  ;;  %3153 = vmatpush1.bf16.msra.mxu1 %v3908_v26 }
 0x290   :  { %3123 = vmatprep.subr.bf16.mxu0 %v3905_v16  ;;  %3155 = vmatprep.subr.bf16.mxu1 %v3914_v30 }
 0x293   :  { %3125 = vmatpush1.bf16.msra.mxu0 %v3911_v28  ;;  %3157 = vmatpush1.bf16.msra.mxu1 %v3920_v43 }
 0x294   :  { %3127 = vmatprep.subr.bf16.mxu0 %v3917_v35  ;;  %3159 = vmatprep.subr.bf16.mxu1 %v3926_v46 }
 0x297   :  { %3129 = vmatpush1.bf16.msra.mxu0 %v3923_v44  ;;  %3161 = vmatpush1.bf16.msra.mxu1 %v3932_v62 }
 0x298   :  { %3163 = vmatprep.subr.bf16.mxu0 %v3929_v51  ;;  %3171 = vmatprep.subr.bf16.mxu1 %v3941_v12 }
 0x34d   :  { %v1065_v53 = vpop.f32.mrb[4].mxu0  ;;  %v1136_v54 = vpop.f32.mrb[4].mxu1 }
 0x34e   :  { %v1141_v36 = vadd.f32 %v1065_v53, %v4001_v42  ;;  %v1067_v55 = vpop.f32.mrb[5].mxu0  ;;  %v1138_v56 = vpop.f32.mrb[5].mxu1  ;;  %v1143_v14 = vadd.f32 %v1136_v54, %v4010_v15 }
 0x34f   :  { %v1142_v57 = vadd.f32 %v1067_v55, %v4003_v48  ;;  %v1144_v3 = vadd.f32 %v1138_v56, %v4007_v4 }
 0x350   :  { %v2827_v60 = vmul.f32 -1.442695, %v1141_v36 }
 0x351   :  { %v2828_v2 = vmul.f32 -1.442695, %v1142_v57  ;;  %v2829_v7 = vmul.f32 -1.442695, %v1144_v3 }
 0x352   :  { %3569 = vpow2.f32 %v2827_v60 }
 0x353   :  { %3571 = vpow2.f32 %v2828_v2 }
 0x354   :  { %3573 = vpow2.f32 %v2829_v7 }
 0x355   :  { %3575 = vtanh.f32 %v1143_v14 }
 0x35c   :  { %v3570_v25 = vpop.eup %3569 }
 0x35d   :  { %v3572_v31 = vpop.eup %3571  ;;  %v1148_v38 = vadd.f32 1.0, %v3570_v25 }
 0x35e   :  { %v1154_v24 = vadd.f32 1.0, %v3572_v31  ;;  %v3574_v41 = vpop.eup %3573 }
 0x35f   :  { %3577 = vrcp.f32 %v1148_v38  ;;  %v3576_v50 = vpop.eup %3575  ;;  %v1161_v55 = vadd.f32 1.0, %v3574_v41 }
 0x360   :  { %3579 = vrcp.f32 %v1154_v24 }
 0x361   :  { %3581 = vrcp.f32 %v1161_v55 }
 0x369   :  { %v3578_v40 = vpop.eup %3577 }
 0x36a   :  { %v3580_v53 = vpop.eup %3579  ;;  %v1165_v36 = vmul.f32 %v3578_v40, %v3576_v50 }
 0x36b   :  { %v1164_v57 = vmul.f32 %v3580_v53, %v4067_v34  ;;  %v3582_v54 = vpop.eup %3581  ;;  %v1172_v34 = vld [vmem:[#allocation8 + $0x18] sm:$0xff] }
 0x36d   :  { %v4121_v56 = vadd.f32 %v1165_v36, %v1164_v57 }
 0x36f   :  { %3583 = vtanh.f32 %v4121_v56 }
 0x379   :  { %v3584_v60 = vpop.eup %3583 }
 0x37a   :  { %v1168_v2 = vmul.f32 %v3584_v60, %v3582_v54 }
 0x37c   :  { %1170 = vst [vmem:[#allocation11 + $0x10] sm:$0xff] %v1168_v2  ;;  %1238 = vmatmul.mubr.f32.vlgmr.msra.gmra.mrb[6].mxu0 %v1168_v2  ;;  %1309 = vmatmul.mubr.f32.vlgmr.msra.gmra.mrb[6].mxu1 %v1168_v2 }
 0x37d   :  { %3165 = vmatpush1.bf16.msra.mxu0 %v3935_v63  ;;  %3173 = vmatpush1.bf16.msra.mxu1 %v3945_v19 }
 0x37e   :  { %3167 = vmatprep.subr.bf16.mxu0 %v3939_v6  ;;  %3175 = vmatprep.subr.bf16.mxu1 %v3951_v21 }
 0x37f   :  { %1382 = vmatprep.mubr.f32.mxu0 %v3768_v1  ;;  %1453 = vmatprep.mubr.f32.mxu1 %v3768_v1 }
 0x381   :  { %3169 = vmatpush1.bf16.msra.mxu0 %v3948_v20  ;;  %3177 = vmatpush1.bf16.msra.mxu1 %v3957_v29 }
 0x382   :  { %3179 = vmatprep.subr.bf16.mxu0 %v3839_v5  ;;  %3211 = vmatprep.subr.bf16.mxu1 %v3849_v18 }
 0x384   :  { %2830 = vmatmul.mubr.msk.f32.vlgmr.msra.gmra.mrb[6].mxu0 %vm337_vm0, %v1172_v34  ;;  %2831 = vmatmul.mubr.msk.f32.vlgmr.msra.gmra.mrb[6].mxu1 %vm337_vm0, %v1172_v34 }
 0x385   :  { %3181 = vmatpush1.bf16.msra.mxu0 %v3841_v9  ;;  %3213 = vmatpush1.bf16.msra.mxu1 %v3854_v23 }
 0x386   :  { %3183 = vmatprep.subr.bf16.mxu0 %v3843_v10  ;;  %3215 = vmatprep.subr.bf16.mxu1 %v3857_v27 }
 0x387   :  { %1556 = vmatprep.mubr.f32.mxu0 %v3768_v1  ;;  %1627 = vmatprep.mubr.f32.mxu1 %v3768_v1 }
 0x389   :  { %3185 = vmatpush1.bf16.msra.mxu0 %v3847_v17  ;;  %3217 = vmatpush1.bf16.msra.mxu1 %v3864_v33 }
 0x38a   :  { %3187 = vmatprep.subr.bf16.mxu0 %v3852_v22  ;;  %3219 = vmatprep.subr.bf16.mxu1 %v3869_v39 }
 0x38d   :  { %3189 = vmatpush1.bf16.msra.mxu0 %v3861_v32  ;;  %3221 = vmatpush1.bf16.msra.mxu1 %v3872_v45 }
 0x38e   :  { %3191 = vmatprep.subr.bf16.mxu0 %v3867_v37  ;;  %3223 = vmatprep.subr.bf16.mxu1 %v3878_v49 }
 0x391   :  { %3193 = vmatpush1.bf16.msra.mxu0 %v3875_v47  ;;  %3225 = vmatpush1.bf16.msra.mxu1 %v3884_v58 }
 0x392   :  { %3195 = vmatprep.subr.bf16.mxu0 %v3881_v52  ;;  %3227 = vmatprep.subr.bf16.mxu1 %v3890_v61 }
 0x395   :  { %3197 = vmatpush1.bf16.msra.mxu0 %v3887_v59  ;;  %3229 = vmatpush1.bf16.msra.mxu1 %v3896_v8 }
 0x396   :  { %3199 = vmatprep.subr.bf16.mxu0 %v3893_v0  ;;  %3231 = vmatprep.subr.bf16.mxu1 %v3902_v13 }
 0x399   :  { %3201 = vmatpush1.bf16.msra.mxu0 %v3899_v11  ;;  %3233 = vmatpush1.bf16.msra.mxu1 %v3908_v26 }
 0x39a   :  { %3203 = vmatprep.subr.bf16.mxu0 %v3905_v16  ;;  %3235 = vmatprep.subr.bf16.mxu1 %v3914_v30 }
 0x39d   :  { %3205 = vmatpush1.bf16.msra.mxu0 %v3911_v28  ;;  %3237 = vmatpush1.bf16.msra.mxu1 %v3920_v43 }
 0x39e   :  { %3207 = vmatprep.subr.bf16.mxu0 %v3917_v35  ;;  %3239 = vmatprep.subr.bf16.mxu1 %v3926_v46 }
 0x3a1   :  { %3209 = vmatpush1.bf16.msra.mxu0 %v3923_v44  ;;  %3241 = vmatpush1.bf16.msra.mxu1 %v3932_v62 }
 0x3a2   :  { %3243 = vmatprep.subr.bf16.mxu0 %v3929_v51  ;;  %3251 = vmatprep.subr.bf16.mxu1 %v3941_v12 }
 0x457   :  { %v1384_v3 = vpop.f32.mrb[6].mxu0  ;;  %v1455_v7 = vpop.f32.mrb[6].mxu1 }
 0x458   :  { %v1460_v14 = vadd.f32 %v1384_v3, %v4001_v42  ;;  %v1386_v25 = vpop.f32.mrb[7].mxu0  ;;  %v1457_v31 = vpop.f32.mrb[7].mxu1  ;;  %v1462_v53 = vadd.f32 %v1455_v7, %v4010_v15 }
 0x459   :  { %v1461_v38 = vadd.f32 %v1386_v25, %v4003_v48  ;;  %v1463_v50 = vadd.f32 %v1457_v31, %v4007_v4 }
 0x45a   :  { %v2832_v24 = vmul.f32 -1.442695, %v1460_v14 }
 0x45b   :  { %v2833_v41 = vmul.f32 -1.442695, %v1461_v38  ;;  %v2834_v40 = vmul.f32 -1.442695, %v1463_v50 }
 0x45c   :  { %3585 = vpow2.f32 %v2832_v24 }
 0x45d   :  { %3587 = vpow2.f32 %v2833_v41 }
 0x45e   :  { %3589 = vpow2.f32 %v2834_v40 }
 0x45f   :  { %3591 = vtanh.f32 %v1462_v53 }
 0x466   :  { %v3586_v36 = vpop.eup %3585 }
 0x467   :  { %v3588_v55 = vpop.eup %3587  ;;  %v1467_v57 = vadd.f32 1.0, %v3586_v36 }
 0x468   :  { %v1473_v54 = vadd.f32 1.0, %v3588_v55  ;;  %v3590_v60 = vpop.eup %3589 }
 0x469   :  { %3593 = vrcp.f32 %v1467_v57  ;;  %v3592_v2 = vpop.eup %3591  ;;  %v1480_v25 = vadd.f32 1.0, %v3590_v60 }
 0x46a   :  { %3595 = vrcp.f32 %v1473_v54 }
 0x46b   :  { %3597 = vrcp.f32 %v1480_v25 }
 0x473   :  { %v3594_v34 = vpop.eup %3593 }
 0x474   :  { %v3596_v3 = vpop.eup %3595  ;;  %v1484_v14 = vmul.f32 %v3594_v34, %v3592_v2 }
 0x475   :  { %v1483_v38 = vmul.f32 %v3596_v3, %v4121_v56  ;;  %v3598_v7 = vpop.eup %3597  ;;  %v1491_v56 = vld [vmem:[#allocation8 + $0x20] sm:$0xff] }
 0x477   :  { %v4175_v31 = vadd.f32 %v1484_v14, %v1483_v38 }
 0x479   :  { %3599 = vtanh.f32 %v4175_v31 }
 0x483   :  { %v3600_v24 = vpop.eup %3599 }
 0x484   :  { %v1487_v41 = vmul.f32 %v3600_v24, %v3598_v7 }
 0x486   :  { %1489 = vst [vmem:[#allocation11 + $0x18] sm:$0xff] %v1487_v41  ;;  %1557 = vmatmul.mubr.f32.vlgmr.msra.gmra.mrb[8].mxu0 %v1487_v41  ;;  %1628 = vmatmul.mubr.f32.vlgmr.msra.gmra.mrb[8].mxu1 %v1487_v41 }
 0x487   :  { %3245 = vmatpush1.bf16.msra.mxu0 %v3935_v63  ;;  %3253 = vmatpush1.bf16.msra.mxu1 %v3945_v19 }
 0x488   :  { %3247 = vmatprep.subr.bf16.mxu0 %v3939_v6  ;;  %3255 = vmatprep.subr.bf16.mxu1 %v3951_v21 }
 0x489   :  { %1701 = vmatprep.mubr.f32.mxu0 %v3768_v1  ;;  %1772 = vmatprep.mubr.f32.mxu1 %v3768_v1 }
 0x48b   :  { %3249 = vmatpush1.bf16.msra.mxu0 %v3948_v20  ;;  %3257 = vmatpush1.bf16.msra.mxu1 %v3957_v29 }
 0x48c   :  { %3259 = vmatprep.subr.bf16.mxu0 %v3839_v5  ;;  %3291 = vmatprep.subr.bf16.mxu1 %v3849_v18 }
 0x48e   :  { %2835 = vmatmul.mubr.msk.f32.vlgmr.msra.gmra.mrb[8].mxu0 %vm337_vm0, %v1491_v56  ;;  %2836 = vmatmul.mubr.msk.f32.vlgmr.msra.gmra.mrb[8].mxu1 %vm337_vm0, %v1491_v56 }
 0x48f   :  { %3261 = vmatpush1.bf16.msra.mxu0 %v3841_v9  ;;  %3293 = vmatpush1.bf16.msra.mxu1 %v3854_v23 }
 0x490   :  { %3263 = vmatprep.subr.bf16.mxu0 %v3843_v10  ;;  %3295 = vmatprep.subr.bf16.mxu1 %v3857_v27 }
 0x491   :  { %1875 = vmatprep.mubr.f32.mxu0 %v3768_v1  ;;  %1946 = vmatprep.mubr.f32.mxu1 %v3768_v1 }
 0x493   :  { %3265 = vmatpush1.bf16.msra.mxu0 %v3847_v17  ;;  %3297 = vmatpush1.bf16.msra.mxu1 %v3864_v33 }
 0x494   :  { %3267 = vmatprep.subr.bf16.mxu0 %v3852_v22  ;;  %3299 = vmatprep.subr.bf16.mxu1 %v3869_v39 }
 0x497   :  { %3269 = vmatpush1.bf16.msra.mxu0 %v3861_v32  ;;  %3301 = vmatpush1.bf16.msra.mxu1 %v3872_v45 }
 0x498   :  { %3271 = vmatprep.subr.bf16.mxu0 %v3867_v37  ;;  %3303 = vmatprep.subr.bf16.mxu1 %v3878_v49 }
 0x49b   :  { %3273 = vmatpush1.bf16.msra.mxu0 %v3875_v47  ;;  %3305 = vmatpush1.bf16.msra.mxu1 %v3884_v58 }
 0x49c   :  { %3275 = vmatprep.subr.bf16.mxu0 %v3881_v52  ;;  %3307 = vmatprep.subr.bf16.mxu1 %v3890_v61 }
 0x49f   :  { %3277 = vmatpush1.bf16.msra.mxu0 %v3887_v59  ;;  %3309 = vmatpush1.bf16.msra.mxu1 %v3896_v8 }
 0x4a0   :  { %3279 = vmatprep.subr.bf16.mxu0 %v3893_v0  ;;  %3311 = vmatprep.subr.bf16.mxu1 %v3902_v13 }
 0x4a3   :  { %3281 = vmatpush1.bf16.msra.mxu0 %v3899_v11  ;;  %3313 = vmatpush1.bf16.msra.mxu1 %v3908_v26 }
 0x4a4   :  { %3283 = vmatprep.subr.bf16.mxu0 %v3905_v16  ;;  %3315 = vmatprep.subr.bf16.mxu1 %v3914_v30 }
 0x4a7   :  { %3285 = vmatpush1.bf16.msra.mxu0 %v3911_v28  ;;  %3317 = vmatpush1.bf16.msra.mxu1 %v3920_v43 }
 0x4a8   :  { %3287 = vmatprep.subr.bf16.mxu0 %v3917_v35  ;;  %3319 = vmatprep.subr.bf16.mxu1 %v3926_v46 }
 0x4ab   :  { %3289 = vmatpush1.bf16.msra.mxu0 %v3923_v44  ;;  %3321 = vmatpush1.bf16.msra.mxu1 %v3932_v62 }
 0x4ac   :  { %3323 = vmatprep.subr.bf16.mxu0 %v3929_v51  ;;  %3331 = vmatprep.subr.bf16.mxu1 %v3941_v12 }
 0x561   :  { %v1703_v50 = vpop.f32.mrb[8].mxu0  ;;  %v1774_v40 = vpop.f32.mrb[8].mxu1 }
 0x562   :  { %v1779_v53 = vadd.f32 %v1703_v50, %v4001_v42  ;;  %v1705_v36 = vpop.f32.mrb[9].mxu0  ;;  %v1776_v55 = vpop.f32.mrb[9].mxu1  ;;  %v1781_v3 = vadd.f32 %v1774_v40, %v4010_v15 }
 0x563   :  { %v1780_v57 = vadd.f32 %v1705_v36, %v4003_v48  ;;  %v1782_v2 = vadd.f32 %v1776_v55, %v4007_v4 }
 0x564   :  { %v2837_v54 = vmul.f32 -1.442695, %v1779_v53 }
 0x565   :  { %v2838_v60 = vmul.f32 -1.442695, %v1780_v57  ;;  %v2839_v34 = vmul.f32 -1.442695, %v1782_v2 }
 0x566   :  { %3601 = vpow2.f32 %v2837_v54 }
 0x567   :  { %3603 = vpow2.f32 %v2838_v60 }
 0x568   :  { %3605 = vpow2.f32 %v2839_v34 }
 0x569   :  { %3607 = vtanh.f32 %v1781_v3 }
 0x570   :  { %v3602_v14 = vpop.eup %3601 }
 0x571   :  { %v3604_v25 = vpop.eup %3603  ;;  %v1786_v38 = vadd.f32 1.0, %v3602_v14 }
 0x572   :  { %v1792_v7 = vadd.f32 1.0, %v3604_v25  ;;  %v3606_v24 = vpop.eup %3605 }
 0x573   :  { %3609 = vrcp.f32 %v1786_v38  ;;  %v3608_v41 = vpop.eup %3607  ;;  %v1799_v36 = vadd.f32 1.0, %v3606_v24 }
 0x574   :  { %3611 = vrcp.f32 %v1792_v7 }
 0x575   :  { %3613 = vrcp.f32 %v1799_v36 }
 0x57d   :  { %v3610_v56 = vpop.eup %3609 }
 0x57e   :  { %v3612_v50 = vpop.eup %3611  ;;  %v1803_v53 = vmul.f32 %v3610_v56, %v3608_v41 }
 0x57f   :  { %v1802_v57 = vmul.f32 %v3612_v50, %v4175_v31  ;;  %v3614_v40 = vpop.eup %3613  ;;  %v1810_v31 = vld [vmem:[#allocation8 + $0x28] sm:$0xff] }
 0x581   :  { %v4229_v55 = vadd.f32 %v1803_v53, %v1802_v57 }
 0x583   :  { %3615 = vtanh.f32 %v4229_v55 }
 0x58d   :  { %v3616_v54 = vpop.eup %3615 }
 0x58e   :  { %v1806_v60 = vmul.f32 %v3616_v54, %v3614_v40 }
 0x590   :  { %1808 = vst [vmem:[#allocation11 + $0x20] sm:$0xff] %v1806_v60  ;;  %1876 = vmatmul.mubr.f32.vlgmr.msra.gmra.mrb[10].mxu0 %v1806_v60  ;;  %1947 = vmatmul.mubr.f32.vlgmr.msra.gmra.mrb[10].mxu1 %v1806_v60 }
 0x591   :  { %3325 = vmatpush1.bf16.msra.mxu0 %v3935_v63  ;;  %3333 = vmatpush1.bf16.msra.mxu1 %v3945_v19 }
 0x592   :  { %3327 = vmatprep.subr.bf16.mxu0 %v3939_v6  ;;  %3335 = vmatprep.subr.bf16.mxu1 %v3951_v21 }
 0x593   :  { %2020 = vmatprep.mubr.f32.mxu0 %v3768_v1  ;;  %2091 = vmatprep.mubr.f32.mxu1 %v3768_v1 }
 0x595   :  { %3329 = vmatpush1.bf16.msra.mxu0 %v3948_v20  ;;  %3337 = vmatpush1.bf16.msra.mxu1 %v3957_v29 }
 0x596   :  { %3339 = vmatprep.subr.bf16.mxu0 %v3839_v5  ;;  %3371 = vmatprep.subr.bf16.mxu1 %v3849_v18 }
 0x598   :  { %2840 = vmatmul.mubr.msk.f32.vlgmr.msra.gmra.mrb[10].mxu0 %vm337_vm0, %v1810_v31  ;;  %2841 = vmatmul.mubr.msk.f32.vlgmr.msra.gmra.mrb[10].mxu1 %vm337_vm0, %v1810_v31 }
 0x599   :  { %3341 = vmatpush1.bf16.msra.mxu0 %v3841_v9  ;;  %3373 = vmatpush1.bf16.msra.mxu1 %v3854_v23 }
 0x59a   :  { %3343 = vmatprep.subr.bf16.mxu0 %v3843_v10  ;;  %3375 = vmatprep.subr.bf16.mxu1 %v3857_v27 }
 0x59b   :  { %2194 = vmatprep.mubr.f32.mxu0 %v3768_v1  ;;  %2265 = vmatprep.mubr.f32.mxu1 %v3768_v1 }
 0x59d   :  { %3345 = vmatpush1.bf16.msra.mxu0 %v3847_v17  ;;  %3377 = vmatpush1.bf16.msra.mxu1 %v3864_v33 }
 0x59e   :  { %3347 = vmatprep.subr.bf16.mxu0 %v3852_v22  ;;  %3379 = vmatprep.subr.bf16.mxu1 %v3869_v39 }
 0x5a1   :  { %3349 = vmatpush1.bf16.msra.mxu0 %v3861_v32  ;;  %3381 = vmatpush1.bf16.msra.mxu1 %v3872_v45 }
 0x5a2   :  { %3351 = vmatprep.subr.bf16.mxu0 %v3867_v37  ;;  %3383 = vmatprep.subr.bf16.mxu1 %v3878_v49 }
 0x5a5   :  { %3353 = vmatpush1.bf16.msra.mxu0 %v3875_v47  ;;  %3385 = vmatpush1.bf16.msra.mxu1 %v3884_v58 }
 0x5a6   :  { %3355 = vmatprep.subr.bf16.mxu0 %v3881_v52  ;;  %3387 = vmatprep.subr.bf16.mxu1 %v3890_v61 }
 0x5a9   :  { %3357 = vmatpush1.bf16.msra.mxu0 %v3887_v59  ;;  %3389 = vmatpush1.bf16.msra.mxu1 %v3896_v8 }
 0x5aa   :  { %3359 = vmatprep.subr.bf16.mxu0 %v3893_v0  ;;  %3391 = vmatprep.subr.bf16.mxu1 %v3902_v13 }
 0x5ad   :  { %3361 = vmatpush1.bf16.msra.mxu0 %v3899_v11  ;;  %3393 = vmatpush1.bf16.msra.mxu1 %v3908_v26 }
 0x5ae   :  { %3363 = vmatprep.subr.bf16.mxu0 %v3905_v16  ;;  %3395 = vmatprep.subr.bf16.mxu1 %v3914_v30 }
 0x5b1   :  { %3365 = vmatpush1.bf16.msra.mxu0 %v3911_v28  ;;  %3397 = vmatpush1.bf16.msra.mxu1 %v3920_v43 }
 0x5b2   :  { %3367 = vmatprep.subr.bf16.mxu0 %v3917_v35  ;;  %3399 = vmatprep.subr.bf16.mxu1 %v3926_v46 }
 0x5b5   :  { %3369 = vmatpush1.bf16.msra.mxu0 %v3923_v44  ;;  %3401 = vmatpush1.bf16.msra.mxu1 %v3932_v62 }
 0x5b6   :  { %3403 = vmatprep.subr.bf16.mxu0 %v3929_v51  ;;  %3411 = vmatprep.subr.bf16.mxu1 %v3941_v12 }
 0x66b   :  { %v2022_v2 = vpop.f32.mrb[10].mxu0  ;;  %v2093_v34 = vpop.f32.mrb[10].mxu1 }
 0x66c   :  { %v2098_v3 = vadd.f32 %v2022_v2, %v4001_v42  ;;  %v2024_v14 = vpop.f32.mrb[11].mxu0  ;;  %v2095_v25 = vpop.f32.mrb[11].mxu1  ;;  %v2100_v50 = vadd.f32 %v2093_v34, %v4010_v15 }
 0x66d   :  { %v2099_v38 = vadd.f32 %v2024_v14, %v4003_v48  ;;  %v2101_v41 = vadd.f32 %v2095_v25, %v4007_v4 }
 0x66e   :  { %v2842_v7 = vmul.f32 -1.442695, %v2098_v3 }
 0x66f   :  { %v2843_v24 = vmul.f32 -1.442695, %v2099_v38  ;;  %v2844_v56 = vmul.f32 -1.442695, %v2101_v41 }
 0x670   :  { %3617 = vpow2.f32 %v2842_v7 }
 0x671   :  { %3619 = vpow2.f32 %v2843_v24 }
 0x672   :  { %3621 = vpow2.f32 %v2844_v56 }
 0x673   :  { %3623 = vtanh.f32 %v2100_v50 }
 0x67a   :  { %v3618_v53 = vpop.eup %3617 }
 0x67b   :  { %v3620_v36 = vpop.eup %3619  ;;  %v2105_v57 = vadd.f32 1.0, %v3618_v53 }
 0x67c   :  { %v2111_v40 = vadd.f32 1.0, %v3620_v36  ;;  %v3622_v54 = vpop.eup %3621 }
 0x67d   :  { %3625 = vrcp.f32 %v2105_v57  ;;  %v3624_v60 = vpop.eup %3623  ;;  %v2118_v14 = vadd.f32 1.0, %v3622_v54 }
 0x67e   :  { %3627 = vrcp.f32 %v2111_v40 }
 0x67f   :  { %3629 = vrcp.f32 %v2118_v14 }
 0x687   :  { %v3626_v31 = vpop.eup %3625 }
 0x688   :  { %v3628_v2 = vpop.eup %3627  ;;  %v2122_v3 = vmul.f32 %v3626_v31, %v3624_v60 }
 0x689   :  { %v2121_v38 = vmul.f32 %v3628_v2, %v4229_v55  ;;  %v3630_v34 = vpop.eup %3629  ;;  %v2129_v55 = vld [vmem:[#allocation8 + $0x30] sm:$0xff] }
 0x68b   :  { %v4283_v25 = vadd.f32 %v2122_v3, %v2121_v38 }
 0x68d   :  { %3631 = vtanh.f32 %v4283_v25 }
 0x697   :  { %v3632_v7 = vpop.eup %3631 }
 0x698   :  { %v2125_v24 = vmul.f32 %v3632_v7, %v3630_v34 }
 0x69a   :  { %2127 = vst [vmem:[#allocation11 + $0x28] sm:$0xff] %v2125_v24  ;;  %2195 = vmatmul.mubr.f32.vlgmr.msra.gmra.mrb[12].mxu0 %v2125_v24  ;;  %2266 = vmatmul.mubr.f32.vlgmr.msra.gmra.mrb[12].mxu1 %v2125_v24 }
 0x69b   :  { %3405 = vmatpush1.bf16.msra.mxu0 %v3935_v63  ;;  %3413 = vmatpush1.bf16.msra.mxu1 %v3945_v19 }
 0x69c   :  { %3407 = vmatprep.subr.bf16.mxu0 %v3939_v6  ;;  %3415 = vmatprep.subr.bf16.mxu1 %v3951_v21 }
 0x69d   :  { %2339 = vmatprep.mubr.f32.mxu0 %v3768_v1  ;;  %2410 = vmatprep.mubr.f32.mxu1 %v3768_v1 }
 0x69f   :  { %3409 = vmatpush1.bf16.msra.mxu0 %v3948_v20  ;;  %3417 = vmatpush1.bf16.msra.mxu1 %v3957_v29 }
 0x6a0   :  { %3419 = vmatprep.subr.bf16.mxu0 %v3839_v5  ;;  %3451 = vmatprep.subr.bf16.mxu1 %v3849_v18 }
 0x6a2   :  { %2845 = vmatmul.mubr.msk.f32.vlgmr.msra.gmra.mrb[12].mxu0 %vm337_vm0, %v2129_v55  ;;  %2846 = vmatmul.mubr.msk.f32.vlgmr.msra.gmra.mrb[12].mxu1 %vm337_vm0, %v2129_v55 }
 0x6a3   :  { %3421 = vmatpush1.bf16.msra.mxu0 %v3841_v9  ;;  %3453 = vmatpush1.bf16.msra.mxu1 %v3854_v23 }
 0x6a4   :  { %3423 = vmatprep.subr.bf16.mxu0 %v3843_v10  ;;  %3455 = vmatprep.subr.bf16.mxu1 %v3857_v27 }
 0x6a5   :  { %2513 = vmatprep.mubr.f32.mxu0 %v3768_v1  ;;  %2584 = vmatprep.mubr.f32.mxu1 %v3768_v1 }
 0x6a7   :  { %3425 = vmatpush1.bf16.msra.mxu0 %v3847_v17  ;;  %3457 = vmatpush1.bf16.msra.mxu1 %v3864_v33 }
 0x6a8   :  { %3427 = vmatprep.subr.bf16.mxu0 %v3852_v22  ;;  %3459 = vmatprep.subr.bf16.mxu1 %v3869_v39 }
 0x6ab   :  { %3429 = vmatpush1.bf16.msra.mxu0 %v3861_v32  ;;  %3461 = vmatpush1.bf16.msra.mxu1 %v3872_v45 }
 0x6ac   :  { %3431 = vmatprep.subr.bf16.mxu0 %v3867_v37  ;;  %3463 = vmatprep.subr.bf16.mxu1 %v3878_v49 }
 0x6af   :  { %3433 = vmatpush1.bf16.msra.mxu0 %v3875_v47  ;;  %3465 = vmatpush1.bf16.msra.mxu1 %v3884_v58 }
 0x6b0   :  { %3435 = vmatprep.subr.bf16.mxu0 %v3881_v52  ;;  %3467 = vmatprep.subr.bf16.mxu1 %v3890_v61 }
 0x6b3   :  { %3437 = vmatpush1.bf16.msra.mxu0 %v3887_v59  ;;  %3469 = vmatpush1.bf16.msra.mxu1 %v3896_v8 }
 0x6b4   :  { %3439 = vmatprep.subr.bf16.mxu0 %v3893_v0  ;;  %3471 = vmatprep.subr.bf16.mxu1 %v3902_v13 }
 0x6b7   :  { %3441 = vmatpush1.bf16.msra.mxu0 %v3899_v11  ;;  %3473 = vmatpush1.bf16.msra.mxu1 %v3908_v26 }
 0x6b8   :  { %3443 = vmatprep.subr.bf16.mxu0 %v3905_v16  ;;  %3475 = vmatprep.subr.bf16.mxu1 %v3914_v30  ;;  %v2448_v30 = vld [vmem:[#allocation8 + $0x38] sm:$0xff] }
 0x6bb   :  { %3445 = vmatpush1.bf16.msra.mxu0 %v3911_v28  ;;  %3477 = vmatpush1.bf16.msra.mxu1 %v3920_v43 }
 0x6bc   :  { %3447 = vmatprep.subr.bf16.mxu0 %v3917_v35  ;;  %3479 = vmatprep.subr.bf16.mxu1 %v3926_v46 }
 0x6bf   :  { %3449 = vmatpush1.bf16.msra.mxu0 %v3923_v44  ;;  %3481 = vmatpush1.bf16.msra.mxu1 %v3932_v62 }
 0x6c0   :  { %3483 = vmatprep.subr.bf16.mxu0 %v3929_v51  ;;  %3491 = vmatprep.subr.bf16.mxu1 %v3941_v12 }
 0x775   :  { %v2341_v5 = vpop.f32.mrb[12].mxu0  ;;  %v2412_v9 = vpop.f32.mrb[12].mxu1 }
 0x776   :  { %v2417_v10 = vadd.f32 %v2341_v5, %v4001_v42  ;;  %v2343_v17 = vpop.f32.mrb[13].mxu0  ;;  %v2414_v18 = vpop.f32.mrb[13].mxu1  ;;  %v2419_v37 = vadd.f32 %v2412_v9, %v4010_v15 }
 0x777   :  { %v2418_v22 = vadd.f32 %v2343_v17, %v4003_v48  ;;  %v2420_v32 = vadd.f32 %v2414_v18, %v4007_v4 }
 0x778   :  { %v2847_v23 = vmul.f32 -1.442695, %v2417_v10 }
 0x779   :  { %v2848_v27 = vmul.f32 -1.442695, %v2418_v22  ;;  %v2849_v33 = vmul.f32 -1.442695, %v2420_v32 }
 0x77a   :  { %3633 = vpow2.f32 %v2847_v23 }
 0x77b   :  { %3635 = vpow2.f32 %v2848_v27 }
 0x77c   :  { %3637 = vpow2.f32 %v2849_v33 }
 0x77d   :  { %3639 = vtanh.f32 %v2419_v37 }
 0x784   :  { %v3634_v39 = vpop.eup %3633 }
 0x785   :  { %v3636_v45 = vpop.eup %3635  ;;  %v2424_v47 = vadd.f32 1.0, %v3634_v39 }
 0x786   :  { %v2430_v49 = vadd.f32 1.0, %v3636_v45  ;;  %v3638_v52 = vpop.eup %3637 }
 0x787   :  { %3641 = vrcp.f32 %v2424_v47  ;;  %v3640_v58 = vpop.eup %3639  ;;  %v2437_v8 = vadd.f32 1.0, %v3638_v52 }
 0x788   :  { %3643 = vrcp.f32 %v2430_v49 }
 0x789   :  { %3645 = vrcp.f32 %v2437_v8 }
 0x791   :  { %v3642_v59 = vpop.eup %3641 }
 0x792   :  { %v3644_v61 = vpop.eup %3643  ;;  %v2441_v0 = vmul.f32 %v3642_v59, %v3640_v58 }
 0x793   :  { %v2440_v11 = vmul.f32 %v3644_v61, %v4283_v25  ;;  %v3646_v16 = vpop.eup %3645 }
 0x795   :  { %v2442_v13 = vadd.f32 %v2441_v0, %v2440_v11 }
 0x797   :  { %3647 = vtanh.f32 %v2442_v13 }
 0x7a1   :  { %v3648_v26 = vpop.eup %3647 }
 0x7a2   :  { %v2444_v28 = vmul.f32 %v3648_v26, %v3646_v16 }
 0x7a4   :  { %2446 = vst [vmem:[#allocation11 + $0x30] sm:$0xff] %v2444_v28  ;;  %2514 = vmatmul.mubr.f32.vlgmr.msra.gmra.mrb[14].mxu0 %v2444_v28  ;;  %2585 = vmatmul.mubr.f32.vlgmr.msra.gmra.mrb[14].mxu1 %v2444_v28 }
 0x7a5   :  { %3485 = vmatpush1.bf16.msra.mxu0 %v3935_v63  ;;  %3493 = vmatpush1.bf16.msra.mxu1 %v3945_v19 }
 0x7a6   :  { %3487 = vmatprep.subr.bf16.mxu0 %v3939_v6  ;;  %3495 = vmatprep.subr.bf16.mxu1 %v3951_v21 }
 0x7a7   :  { %2658 = vmatprep.mubr.f32.mxu0 %v3768_v1  ;;  %2729 = vmatprep.mubr.f32.mxu1 %v3768_v1 }
 0x7a9   :  { %3489 = vmatpush1.bf16.msra.mxu0 %v3948_v20  ;;  %3497 = vmatpush1.bf16.msra.mxu1 %v3957_v29 }
 0x7ac   :  { %2850 = vmatmul.mubr.msk.f32.vlgmr.msra.gmra.mrb[14].mxu0 %vm337_vm0, %v2448_v30  ;;  %2851 = vmatmul.mubr.msk.f32.vlgmr.msra.gmra.mrb[14].mxu1 %vm337_vm0, %v2448_v30 }
 0x87f   :  { %v2660_v35 = vpop.f32.mrb[14].mxu0  ;;  %v2731_v43 = vpop.f32.mrb[14].mxu1 }
 0x880   :  { %v2736_v44 = vadd.f32 %v2660_v35, %v4001_v42  ;;  %v2662_v46 = vpop.f32.mrb[15].mxu0  ;;  %v2733_v51 = vpop.f32.mrb[15].mxu1  ;;  %v2738_v19 = vadd.f32 %v2731_v43, %v4010_v15 }
 0x881   :  { %v2737_v62 = vadd.f32 %v2662_v46, %v4003_v48  ;;  %v2739_v1 = vadd.f32 %v2733_v51, %v4007_v4 }
 0x882   :  { %v2852_v63 = vmul.f32 -1.442695, %v2736_v44 }
 0x883   :  { %v2853_v6 = vmul.f32 -1.442695, %v2737_v62  ;;  %v2854_v12 = vmul.f32 -1.442695, %v2739_v1 }
 0x884   :  { %3649 = vpow2.f32 %v2852_v63 }
 0x885   :  { %3651 = vpow2.f32 %v2853_v6 }
 0x886   :  { %3653 = vpow2.f32 %v2854_v12 }
 0x887   :  { %3655 = vtanh.f32 %v2738_v19 }
 0x88e   :  { %v3650_v20 = vpop.eup %3649 }
 0x88f   :  { %v3652_v21 = vpop.eup %3651  ;;  %v2743_v29 = vadd.f32 1.0, %v3650_v20 }
 0x890   :  { %v2749_v41 = vadd.f32 1.0, %v3652_v21  ;;  %v3654_v42 = vpop.eup %3653 }
 0x891   :  { %3657 = vrcp.f32 %v2743_v29  ;;  %v3656_v56 = vpop.eup %3655  ;;  %v2756_v36 = vadd.f32 1.0, %v3654_v42 }
 0x892   :  { %3659 = vrcp.f32 %v2749_v41 }
 0x893   :  { %3661 = vrcp.f32 %v2756_v36 }
 0x89b   :  { %v3658_v48 = vpop.eup %3657 }
 0x89c   :  { %v3660_v50 = vpop.eup %3659  ;;  %v2760_v53 = vmul.f32 %v3658_v48, %v3656_v56 }
 0x89d   :  { %v2759_v57 = vmul.f32 %v3660_v50, %v2442_v13  ;;  %v3662_v4 = vpop.eup %3661 }
 0x89f   :  { %v2761_v40 = vadd.f32 %v2760_v53, %v2759_v57 }
 0x8a1   :  { %3663 = vtanh.f32 %v2761_v40 }
 0x8ab   :  { %v3664_v15 = vpop.eup %3663 }
 0x8ac   :  { %v2763_v54 = vmul.f32 %v3664_v15, %v3662_v4 }
 0x8ae   :  { %2765 = vst [vmem:[#allocation11 + $0x38] sm:$0xff] %v2763_v54 }
 0x8af   :  { %3742 = shalt.err (!%p3739_p0)
}
 0x8b0   :  { %s3743_s6 = scalar_lea.hbm %s4370_s4, 1024 }
 0x8b1   :  { %p3744_p1 = scmp.ne.s32.totalorder %s4370_s4, %s3743_s6  ;;  %p3747_p2 = scmp.lt.u32.totalorder %s3743_s6, %s4370_s4 }
 0x8b3   :  { %p3749_p3 = pnand %p3747_p2, %p3744_p1 }
 0x8b5   :  { %3752 = shalt.err (!%p3749_p3)
}
 0x8b6   :  { %2779 = dma.vmem_to_hbm [thread:$0]  %s2774_s3, 1024, %s4370_s4, [#allocation10], %s3764_s25, %s3764_s25, %s3765_s26  }
 0x8b7   :  { %3761 = dma.done.wait [#allocation10], 1024  }
 0x8b8   :  { %3762 = vsyncadd [#allocation10], 4294966272 }
 0x8b9   :  { %2783 = vsyncpa [#allocation9], 1 }
 0x8ba   :  { %2784 = vsyncpa [#allocation10], 1 }
 0x8bb   :  { %2785 = vsyncmov [#allocation7] }
 0x8be   :  { %s2786_s13 = vpop.sfrf %2785 }
 0x8bf   :  { %p2855_p4 = scmp.ne.s32.totalorder %s2786_s13, 0 }
 0x8c1   :  { %2790 = shalt.err (%p2855_p4)  }
 0x8c2   :  { %2792 = vsyncmov [#allocation7 + $0x1] }
 0x8c5   :  { %s2793_s0 = vpop.sfrf %2792 }
 0x8c6   :  { %p2856_p5 = scmp.ne.s32.totalorder %s2793_s0, 0 }
 0x8c8   :  { %2797 = shalt.err (%p2856_p5)  }
 0x8c9   :  { %2799 = vsyncmov [#allocation7 + $0x2] }
 0x8cc   :  { %s2800_s14 = vpop.sfrf %2799 }
 0x8cd   :  { %p2857_p6 = scmp.ne.s32.totalorder %s2800_s14, 0 }
 0x8cf   :  { %2804 = shalt.err (%p2857_p6)  }

</bundles_post_ra>
